<compile_context>
chip_gen: v7x
topology: tpu7x:2x2x1
jax: 0.10.0
libtpu: 0.0.40
codegen_flags: <defaults>
</compile_context>

<pallas_src>
import functools

import jax
import jax.numpy as jnp
from jax.experimental import pallas as pl
from jax.experimental.pallas import tpu as pltpu

Z_DIM = 20          # latent dim from the PyTorch module
H1 = 2048
H2 = 256
LEAKY_SLOPE = 0.01  # PyTorch nn.LeakyReLU default
LANE = 128
SUBLANE = 8


def _round_up(x, m):
    return (x + m - 1) // m * m


def encoder_kernel(x_ref, w1_ref, b1_ref, w2_ref, b2_ref, w3_ref, b3_ref,
                   o_ref, h1_acc, *, bf16_epilogue):
    # TODO(synk): nn.Dropout(0.5) is identity at inference; a training-mode
    # forward would need pltpu.prng_seed / prng_random_bits masking with 2x scale.
    k = pl.program_id(1)

    @pl.when(k == 0)
    def _():
        h1_acc[...] = jnp.zeros_like(h1_acc)

    # fc1 partial product for this K chunk (bf16 MXU inputs, f32 accumulation).
    x = x_ref[...].astype(jnp.bfloat16)
    h1_acc[...] += jnp.dot(x, w1_ref[...], preferred_element_type=jnp.float32)

    @pl.when(k == pl.num_programs(1) - 1)
    def _():
        h = h1_acc[...] + b1_ref[...]
        if bf16_epilogue:
            # bf16 LeakyReLU over the wide (tb, 2048) activation: halves VALU
            # work on v6e/v7x and is already the dtype fc2's MXU wants.
            h = h.astype(jnp.bfloat16)
        h = jnp.maximum(h, LEAKY_SLOPE * h)            # LeakyReLU (2 VALU ops)
        h = h.astype(jnp.bfloat16)
        # fc2 + LeakyReLU (only 256 wide -> keep the epilogue in f32).
        h = jnp.dot(h, w2_ref[...], preferred_element_type=jnp.float32) + b2_ref[...]
        h = jnp.maximum(h, LEAKY_SLOPE * h)
        # fc3 (no activation); output feature dim is lane-padded to 128.
        o_ref[...] = jnp.dot(h.astype(jnp.bfloat16), w3_ref[...],
                             preferred_element_type=jnp.float32) + b3_ref[...]


def prepare_params(params, *, tk_max=1024):
    """One-time weight prep (padding + bf16 cast), hoisted out of the hot path."""
    w1, b1, w2, b2, w3, b3 = params
    d = w1.shape[0]
    z = w3.shape[1]
    tk = min(_round_up(d, LANE), tk_max)     # fc1 K tile (multiple of 128 lanes)
    dp = _round_up(d, tk)
    zp = _round_up(z, LANE)                  # lane-dense output stores
    if dp != d:
        w1 = jnp.pad(w1, ((0, dp - d), (0, 0)))
    if zp != z:
        w3 = jnp.pad(w3, ((0, 0), (0, zp - z)))
        b3 = jnp.pad(b3, ((0, 0), (0, zp - z)))
    return dict(
        w1=w1.astype(jnp.bfloat16), b1=b1.astype(jnp.float32),
        w2=w2.astype(jnp.bfloat16), b2=b2.astype(jnp.float32),
        w3=w3.astype(jnp.bfloat16), b3=b3.astype(jnp.float32),
        tk=tk, z=z,
    )


def _pick_batch_tiling(B, tb_max):
    """Batch tile: multiple of 8, >=2 blocks when possible (v7x megacore),
    sized to minimise padded rows."""
    bp8 = _round_up(B, SUBLANE)
    nb = max(1, -(-bp8 // tb_max))           # ceil(bp8 / tb_max)
    if bp8 >= 2 * SUBLANE:
        nb = max(nb, 2)                      # give the 2nd TensorCore work
    tb = _round_up(-(-bp8 // nb), SUBLANE)   # even split, multiple of 8
    bp = _round_up(B, tb)
    return tb, bp


def encoder_forward(x, prep, *, tb_max=512, vmem_limit_bytes=32 << 20,
                    bf16_epilogue=True):
    """Fused, K-tiled, batch-tiled 3-layer MLP forward (eval-mode dropout)."""
    w1, b1 = prep["w1"], prep["b1"]
    w2, b2 = prep["w2"], prep["b2"]
    w3, b3 = prep["w3"], prep["b3"]
    tk, z = prep["tk"], prep["z"]

    B, D = x.shape
    dp, h1 = w1.shape
    h2 = w2.shape[1]
    zp = w3.shape[1]
    nk = dp // tk

    tb, bp = _pick_batch_tiling(B, tb_max)
    if (bp, dp) != (B, D):
        x = jnp.pad(x, ((0, bp - B), (0, dp - D)))

    # Constant-index blocks: single VMEM buffer (no pointless double-buffering).
    resident = pl.Buffered(1)
    kernel = functools.partial(encoder_kernel, bf16_epilogue=bf16_epilogue)

    out = pl.pallas_call(
        kernel,
        out_shape=jax.ShapeDtypeStruct((bp, zp), jnp.float32),
        grid=(bp // tb, nk),
        in_specs=[
            # x: batch- and K-tiled, pipelined.
            pl.BlockSpec((tb, tk), lambda i, k: (i, k)),
            # w1: K-tiled (pipelined over k); resident when there is only one K block.
            pl.BlockSpec((tk, h1), lambda i, k: (k, 0),
                         pipeline_mode=(resident if nk == 1 else None)),
            pl.BlockSpec((1, h1), lambda i, k: (0, 0), pipeline_mode=resident),
            pl.BlockSpec((h1, h2), lambda i, k: (0, 0), pipeline_mode=resident),
            pl.BlockSpec((1, h2), lambda i, k: (0, 0), pipeline_mode=resident),
            pl.BlockSpec((h2, zp), lambda i, k: (0, 0), pipeline_mode=resident),
            pl.BlockSpec((1, zp), lambda i, k: (0, 0), pipeline_mode=resident),
        ],
        out_specs=pl.BlockSpec((tb, zp), lambda i, k: (i, 0)),
        scratch_shapes=[pltpu.VMEM((tb, h1), jnp.float32)],   # fc1 accumulator
        compiler_params=pltpu.CompilerParams(
            dimension_semantics=("parallel", "arbitrary"),
            vmem_limit_bytes=vmem_limit_bytes,   # per-generation tunable
        ),
    )(x, w1, b1, w2, b2, w3, b3)
    return out[:B, :z]


def init_params(key, input_dim):
    """Deterministic init matching nn.Linear shapes; weights stored as (in, out)."""
    ks = jax.random.split(key, 6)

    def linear(kw, kb, fan_in, fan_out):
        bound = 1.0 / jnp.sqrt(fan_in)
        # PyTorch nn.Linear weight is (out, in); we store its transpose (in, out).
        w = jax.random.uniform(kw, (fan_in, fan_out), jnp.float32, -bound, bound)
        b = jax.random.uniform(kb, (1, fan_out), jnp.float32, -bound, bound)
        return w, b

    w1, b1 = linear(ks[0], ks[1], input_dim, H1)
    w2, b2 = linear(ks[2], ks[3], H1, H2)
    w3, b3 = linear(ks[4], ks[5], H2, Z_DIM)
    return (w1, b1, w2, b2, w3, b3)


def encoder_forward_ref(x, params, *, bf16_epilogue=True):
    """Pure-JAX reference with the same bf16-weight / f32-accumulate numerics."""
    w1, b1, w2, b2, w3, b3 = params
    h = jnp.dot(x.astype(jnp.bfloat16), w1.astype(jnp.bfloat16),
                preferred_element_type=jnp.float32) + b1
    if bf16_epilogue:
        h = h.astype(jnp.bfloat16)
    h = jnp.maximum(h, LEAKY_SLOPE * h)
    h = h.astype(jnp.bfloat16)
    h = jnp.dot(h, w2.astype(jnp.bfloat16),
                preferred_element_type=jnp.float32) + b2
    h = jnp.maximum(h, LEAKY_SLOPE * h)
    return jnp.dot(h.astype(jnp.bfloat16), w3.astype(jnp.bfloat16),
                   preferred_element_type=jnp.float32) + b3


if __name__ == "__main__":
    key = jax.random.PRNGKey(0)
    kx, kp = jax.random.split(key)

    B, INPUT_DIM = 16, 256
    x = jax.random.normal(kx, (B, INPUT_DIM), dtype=jnp.float32)
    params = init_params(kp, INPUT_DIM)

    prep = prepare_params(params)            # one-time pad + bf16 cast (hoisted)
    out = encoder_forward(x, prep)
    out = jax.block_until_ready(out)

    ref = encoder_forward_ref(x, params)
    assert out.shape == (B, Z_DIM)
    max_err = float(jnp.max(jnp.abs(out - ref)))
    assert jnp.allclose(out, ref, atol=2e-2, rtol=2e-2), max_err
    print("KERNEL_OK")
</pallas_src>

<mosaic_0001>
module attributes {stable_mosaic.version = 11 : i64} {
  func.func @encoder_kernel(%arg0: i32, %arg1: i32, %arg2: memref<8x256xf32, #tpu.memory_space<vmem>>, %arg3: memref<256x2048xbf16, #tpu.memory_space<vmem>>, %arg4: memref<1x2048xf32, #tpu.memory_space<vmem>>, %arg5: memref<2048x256xbf16, #tpu.memory_space<vmem>>, %arg6: memref<1x256xf32, #tpu.memory_space<vmem>>, %arg7: memref<256x128xbf16, #tpu.memory_space<vmem>>, %arg8: memref<1x128xf32, #tpu.memory_space<vmem>>, %arg9: memref<8x128xf32, #tpu.memory_space<vmem>>, %arg10: memref<8x2048xf32, #tpu.memory_space<vmem>>) attributes {dimension_semantics = [#tpu.dimension_semantics<parallel>, #tpu.dimension_semantics<arbitrary>], iteration_bounds = array<i64: 2, 1>, scalar_prefetch = 0 : i64, scratch_operands = 1 : i64, tpu.core_type = #tpu.core_type<tc>, window_params = [{transform_indices = @transform_0, window_bounds = array<i64: 8, 256>}, {pipeline_mode = #tpu.pipeline_mode<synchronous>, transform_indices = @transform_1, window_bounds = array<i64: 256, 2048>}, {pipeline_mode = #tpu.pipeline_mode<synchronous>, transform_indices = @transform_2, window_bounds = array<i64: 1, 2048>}, {pipeline_mode = #tpu.pipeline_mode<synchronous>, transform_indices = @transform_3, window_bounds = array<i64: 2048, 256>}, {pipeline_mode = #tpu.pipeline_mode<synchronous>, transform_indices = @transform_4, window_bounds = array<i64: 1, 256>}, {pipeline_mode = #tpu.pipeline_mode<synchronous>, transform_indices = @transform_5, window_bounds = array<i64: 256, 128>}, {pipeline_mode = #tpu.pipeline_mode<synchronous>, transform_indices = @transform_6, window_bounds = array<i64: 1, 128>}, {transform_indices = @transform_7, window_bounds = array<i64: 8, 128>}]} {
    %c0_i32 = arith.constant 0 : i32
    %0 = arith.cmpi eq, %arg1, %c0_i32 : i32
    %1 = arith.extui %0 : i1 to i32
    %c0_i32_0 = arith.constant 0 : i32
    %2 = arith.cmpi ne, %1, %c0_i32_0 : i32
    scf.if %2 {
      %cst_10 = arith.constant 0.000000e+00 : f32
      %13 = vector.broadcast %cst_10 : f32 to vector<8x2048xf32>
      %c0_11 = arith.constant 0 : index
      %c0_12 = arith.constant 0 : index
      %14 = vector.load %arg10[%c0_11, %c0_12] : memref<8x2048xf32, #tpu.memory_space<vmem>>, vector<8x2048xf32>
      tpu.vector_store %arg10[%c0_11, %c0_12], %13 {strides = array<i32>} : memref<8x2048xf32, #tpu.memory_space<vmem>>, vector<8x2048xf32>,
    } else {
    }
    %c0 = arith.constant 0 : index
    %c0_1 = arith.constant 0 : index
    %3 = vector.load %arg2[%c0, %c0_1] : memref<8x256xf32, #tpu.memory_space<vmem>>, vector<8x256xf32>
    %4 = arith.truncf %3 : vector<8x256xf32> to vector<8x256xbf16>
    %c0_2 = arith.constant 0 : index
    %c0_3 = arith.constant 0 : index
    %5 = vector.load %arg10[%c0_2, %c0_3] : memref<8x2048xf32, #tpu.memory_space<vmem>>, vector<8x2048xf32>
    %c0_4 = arith.constant 0 : index
    %c0_5 = arith.constant 0 : index
    %6 = vector.load %arg3[%c0_4, %c0_5] : memref<256x2048xbf16, #tpu.memory_space<vmem>>, vector<256x2048xbf16>
    %cst = arith.constant dense<0.000000e+00> : vector<8x2048xf32>
    %7 = tpu.matmul %4, %6, %cst {dimension_numbers = #tpu.dot_dimension_numbers<[1], [0], [0], [1], [0, 0, 1, 1], [], []>} : vector<8x256xbf16>, vector<256x2048xbf16>, vector<8x2048xf32> -> vector<8x2048xf32>
    %8 = arith.addf %5, %7 : vector<8x2048xf32>
    %c0_6 = arith.constant 0 : index
    %c0_7 = arith.constant 0 : index
    %9 = vector.load %arg10[%c0_6, %c0_7] : memref<8x2048xf32, #tpu.memory_space<vmem>>, vector<8x2048xf32>
    tpu.vector_store %arg10[%c0_6, %c0_7], %8 {strides = array<i32>} : memref<8x2048xf32, #tpu.memory_space<vmem>>, vector<8x2048xf32>,
    %c0_i32_8 = arith.constant 0 : i32
    %10 = arith.cmpi eq, %arg1, %c0_i32_8 : i32
    %11 = arith.extui %10 : i1 to i32
    %c0_i32_9 = arith.constant 0 : i32
    %12 = arith.cmpi ne, %11, %c0_i32_9 : i32
    scf.if %12 {
      %c0_10 = arith.constant 0 : index
      %c0_11 = arith.constant 0 : index
      %13 = vector.load %arg10[%c0_10, %c0_11] : memref<8x2048xf32, #tpu.memory_space<vmem>>, vector<8x2048xf32>
      %c0_12 = arith.constant 0 : index
      %c0_13 = arith.constant 0 : index
      %14 = vector.load %arg4[%c0_12, %c0_13] : memref<1x2048xf32, #tpu.memory_space<vmem>>, vector<1x2048xf32>
      %15 = vector.broadcast %14 : vector<1x2048xf32> to vector<8x2048xf32>
      %16 = arith.addf %13, %15 : vector<8x2048xf32>
      %17 = arith.truncf %16 : vector<8x2048xf32> to vector<8x2048xbf16>
      %cst_14 = arith.constant 1.000980e-02 : bf16
      %18 = vector.broadcast %cst_14 : bf16 to vector<8x2048xbf16>
      %19 = arith.mulf %18, %17 : vector<8x2048xbf16>
      %20 = arith.maximumf %17, %19 : vector<8x2048xbf16>
      %c0_15 = arith.constant 0 : index
      %c0_16 = arith.constant 0 : index
      %21 = vector.load %arg5[%c0_15, %c0_16] : memref<2048x256xbf16, #tpu.memory_space<vmem>>, vector<2048x256xbf16>
      %cst_17 = arith.constant dense<0.000000e+00> : vector<8x256xf32>
      %22 = tpu.matmul %20, %21, %cst_17 {dimension_numbers = #tpu.dot_dimension_numbers<[1], [0], [0], [1], [0, 0, 1, 1], [], []>} : vector<8x2048xbf16>, vector<2048x256xbf16>, vector<8x256xf32> -> vector<8x256xf32>
      %c0_18 = arith.constant 0 : index
      %c0_19 = arith.constant 0 : index
      %23 = vector.load %arg6[%c0_18, %c0_19] : memref<1x256xf32, #tpu.memory_space<vmem>>, vector<1x256xf32>
      %24 = vector.broadcast %23 : vector<1x256xf32> to vector<8x256xf32>
      %25 = arith.addf %22, %24 : vector<8x256xf32>
      %cst_20 = arith.constant 0.00999999977 : f32
      %26 = vector.broadcast %cst_20 : f32 to vector<8x256xf32>
      %27 = arith.mulf %26, %25 : vector<8x256xf32>
      %28 = arith.maximumf %25, %27 : vector<8x256xf32>
      %29 = arith.truncf %28 : vector<8x256xf32> to vector<8x256xbf16>
      %c0_21 = arith.constant 0 : index
      %c0_22 = arith.constant 0 : index
      %30 = vector.load %arg7[%c0_21, %c0_22] : memref<256x128xbf16, #tpu.memory_space<vmem>>, vector<256x128xbf16>
      %cst_23 = arith.constant dense<0.000000e+00> : vector<8x128xf32>
      %31 = tpu.matmul %29, %30, %cst_23 {dimension_numbers = #tpu.dot_dimension_numbers<[1], [0], [0], [1], [0, 0, 1, 1], [], []>} : vector<8x256xbf16>, vector<256x128xbf16>, vector<8x128xf32> -> vector<8x128xf32>
      %c0_24 = arith.constant 0 : index
      %c0_25 = arith.constant 0 : index
      %32 = vector.load %arg8[%c0_24, %c0_25] : memref<1x128xf32, #tpu.memory_space<vmem>>, vector<1x128xf32>
      %33 = vector.broadcast %32 : vector<1x128xf32> to vector<8x128xf32>
      %34 = arith.addf %31, %33 : vector<8x128xf32>
      %c0_26 = arith.constant 0 : index
      %c0_27 = arith.constant 0 : index
      %35 = vector.load %arg9[%c0_26, %c0_27] : memref<8x128xf32, #tpu.memory_space<vmem>>, vector<8x128xf32>
      tpu.vector_store %arg9[%c0_26, %c0_27], %34 {strides = array<i32>} : memref<8x128xf32, #tpu.memory_space<vmem>>, vector<8x128xf32>,
    } else {
    }
    return
  }
  func.func @transform_0(%arg0: i32, %arg1: i32) -> (i32, i32) {
    %c0_i32 = arith.constant 0 : i32
    return %arg0, %arg1 : i32, i32
  }
  func.func @transform_1(%arg0: i32, %arg1: i32) -> (i32, i32) {
    %c0_i32 = arith.constant 0 : i32
    %c0_i32_0 = arith.constant 0 : i32
    return %arg1, %c0_i32 : i32, i32
  }
  func.func @transform_2(%arg0: i32, %arg1: i32) -> (i32, i32) {
    %c0_i32 = arith.constant 0 : i32
    %c0_i32_0 = arith.constant 0 : i32
    %c0_i32_1 = arith.constant 0 : i32
    return %c0_i32, %c0_i32_0 : i32, i32
  }
  func.func @transform_3(%arg0: i32, %arg1: i32) -> (i32, i32) {
    %c0_i32 = arith.constant 0 : i32
    %c0_i32_0 = arith.constant 0 : i32
    %c0_i32_1 = arith.constant 0 : i32
    return %c0_i32, %c0_i32_0 : i32, i32
  }
  func.func @transform_4(%arg0: i32, %arg1: i32) -> (i32, i32) {
    %c0_i32 = arith.constant 0 : i32
    %c0_i32_0 = arith.constant 0 : i32
    %c0_i32_1 = arith.constant 0 : i32
    return %c0_i32, %c0_i32_0 : i32, i32
  }
  func.func @transform_5(%arg0: i32, %arg1: i32) -> (i32, i32) {
    %c0_i32 = arith.constant 0 : i32
    %c0_i32_0 = arith.constant 0 : i32
    %c0_i32_1 = arith.constant 0 : i32
    return %c0_i32, %c0_i32_0 : i32, i32
  }
  func.func @transform_6(%arg0: i32, %arg1: i32) -> (i32, i32) {
    %c0_i32 = arith.constant 0 : i32
    %c0_i32_0 = arith.constant 0 : i32
    %c0_i32_1 = arith.constant 0 : i32
    return %c0_i32, %c0_i32_0 : i32, i32
  }
  func.func @transform_7(%arg0: i32, %arg1: i32) -> (i32, i32) {
    %c0_i32 = arith.constant 0 : i32
    %c0_i32_0 = arith.constant 0 : i32
    return %arg0, %c0_i32 : i32, i32
  }
}

</mosaic_0001>

<bundles_post_ra>
// kernel: tpu_custom_call.1
= control target key start
LH: loop header
LB: loop body
LE: loop exit
PB: predicated region body
PF: predicated region fallthrough
CT: control target
= control target key end

     0   :  { %s6469_s0 = inlined_call_operand.hbm [shape: f32[16,256], index: 0, kind: input, shape index: {}]   ;;  %s6470_s1 = inlined_call_operand.hbm [shape: bf16[256,2048], index: 1, kind: input, shape index: {}]   ;;  %s6471_s2 = inlined_call_operand.hbm [shape: f32[1,2048], index: 2, kind: input, shape index: {}]   ;;  %s6472_s3 = inlined_call_operand.hbm [shape: bf16[2048,256], index: 3, kind: input, shape index: {}]   ;;  %s6473_s4 = inlined_call_operand.vmem [shape: f32[1,256], index: 4, kind: input, shape index: {}]   ;;  %s6474_s5 = inlined_call_operand.hbm [shape: bf16[256,128], index: 5, kind: input, shape index: {}]   ;;  %s6475_s6 = inlined_call_operand.vmem [shape: f32[1,128], index: 6, kind: input, shape index: {}]   ;;  %s6476_s7 = inlined_call_operand.hbm [shape: f32[16,128], index: 7, kind: output, shape index: {}]  }
   0x1   :  { %6483 = sst [smem:[#allocation17_spill]] %s6470_s1 }
   0x2   :  { %6484 = sst [smem:[#allocation18_spill]] %s6471_s2 }
   0x3   :  { %12 = vsyncpa [#allocation4], 0 }
   0x4   :  { %14 = vsyncpa [#allocation4 + $0x1], 0 }
   0x5   :  { %15 = vsyncpa [#allocation7], 0 }
   0x6   :  { %16 = vsyncpa [#allocation10], 0 }
   0x7   :  { %17 = vsyncpa [#allocation5], 0 }
   0x8   :  { %19 = vsyncpa [#allocation5 + $0x1], 0  ;;  %s6074_s24 = smov 0   ;;  %s6076_s25 = smov 0  }
   0x9   :  { %s6078_s26 = smov 0   ;;  %s6080_s27 = smov 0  }
   0xa   :  { %s6082_s28 = smov 0   ;;  %s6084_s29 = smov 0  }
   0xb LB: > { %s6477_s30 = sadd.s32 4294967295, %s6021_s29   ;;  %p4678_p0 = scmp.ge.s32.totalorder %s6021_s29, 1  ;;  %s6021_s29 = sphi %s6084_s29, %s25_s29   ;;  %s6017_s28 = sphi %s6082_s28, %s6508_s28   ;;  %s6013_s27 = sphi %s6080_s27, %s6507_s27   ;;  %s6009_s26 = sphi %s6078_s26, %s6506_s26   ;;  %s6005_s25 = sphi %s6076_s25, %s6505_s25   ;;  %s6001_s24 = sphi %s6074_s24, %s6504_s24  }
   0xc   : > { %p6108_p1 = scmp.eq.s32.totalorder %s6477_s30, 0  ;;  %p227_p2 = scmp.lt.s32.totalorder %s6021_s29, 3 }
   0xd   : > { %s6023_s10 = smov [#allocation6]   ;;  %s6024_s13 = smov [#allocation9]  }
   0xe   : > { %s6485_s8 = scalar_select %p6108_p1, 1, 0 }
   0xf   : > { %p6113_p3 = pnand %p4678_p0, %p227_p2  ;;  %s243_s11 = sshll.u32 %s6023_s10, 4  ;;  %s6117_s11 = int_to_ptr.vmem [resolvable:$true] %s243_s11 }
  0x10   : > { %s267_s14 = sshll.u32 %s6024_s13, 4  ;;  %s6488_s1 = sld [smem:[#allocation17_spill]]  ;;  %s6128_s14 = int_to_ptr.vmem [resolvable:$true] %s267_s14 }
  0x11   : > { %s6486_s9 = scalar_select %p6113_p3, 1, 0 }
  0x12   : > { %p5300_p4 = pneg %p6113_p3 }
  0x14   : > { %p6124_p6 = pnand %p5300_p4, %p6108_p1 }
  0x16   : > { %s5789_s17 = scalar_lea.hbm %s6488_s1, 32768  ;;  %p6138_p8 = pneg %p6124_p6 }
  0x17   : > { %p5790_p7 = scmp.ne.s32.totalorder %s6488_s1, %s5789_s17  ;;  %p5796_p11 = scmp.lt.u32.totalorder %s5789_s17, %s6488_s1 }
  0x19   : > { %p5792_p9 = pnand %p6138_p8, %p5790_p7 }
  0x1b   : > { %p5793_p10 = pneg %p5792_p9 }
  0x1d   : > { %p5798_p12 = pnand %p5796_p11, %p5793_p10 }
  0x1f   : > { %5801 = shalt.err (!%p5798_p12)
}
  0x20   : > { %s5802_s23 = scalar_lea.vmem %s6117_s11, 32768  ;;  %p5810_p4 = scmp.lt.s32.totalorder %s6117_s11, %s6117_s11 }
  0x21   : > { %p5803_p13 = scmp.ne.s32.totalorder %s6117_s11, %s5802_s23  ;;  %p5811_p5 = scmp.lt.s32.totalorder %s5802_s23, %s5802_s23 }
  0x23   : > { %p5805_p0 = pnand %p5803_p13, %p6138_p8  ;;  %p5812_p7 = por %p5811_p5, %p5810_p4 }
  0x25   : > { %p5806_p2 = pneg %p5805_p0 }
  0x27   : > { %p5813_p9 = pnand %p5812_p7, %p5806_p2 }
  0x29   : > { %5816 = shalt.err (!%p5813_p9)
}
  0x2a   : > { %s6025_s10 = smov 1024   ;;  %s6478_s13 = smov 64  }
  0x2b   : > { %5303 = dma.hbm_to_vmem [thread:$0]  (!%p6124_p6), %s6488_s1, 32768, %s6117_s11, [#allocation7], %s6025_s10, %s6025_s10, %s6478_s13  }
  0x2c   : > { %s5817_s19 = scalar_lea.hbm %s6472_s3, 32768 }
  0x2d   : > { %p5818_p5 = scmp.ne.s32.totalorder %s6472_s3, %s5817_s19  ;;  %p5824_p12 = scmp.lt.u32.totalorder %s5817_s19, %s6472_s3 }
  0x2f   : > { %p5820_p10 = pnand %p5818_p5, %p6138_p8 }
  0x31   : > { %p5821_p11 = pneg %p5820_p10 }
  0x33   : > { %p5826_p13 = pnand %p5824_p12, %p5821_p11 }
  0x35   : > { %5829 = shalt.err (!%p5826_p13)
}
  0x36   : > { %s5830_s11 = scalar_lea.vmem %s6128_s14, 32768  ;;  %p5838_p7 = scmp.lt.s32.totalorder %s6128_s14, %s6128_s14 }
  0x37   : > { %p5831_p0 = scmp.ne.s32.totalorder %s6128_s14, %s5830_s11  ;;  %p5839_p9 = scmp.lt.s32.totalorder %s5830_s11, %s5830_s11 }
  0x39   : > { %p5833_p2 = pnand %p5831_p0, %p6138_p8  ;;  %p5840_p5 = por %p5839_p9, %p5838_p7 }
  0x3b   : > { %p5834_p4 = pneg %p5833_p2 }
  0x3d   : > { %p5841_p10 = pnand %p5840_p5, %p5834_p4 }
  0x3f   : > { %5844 = shalt.err (!%p5841_p10)
}
  0x40   : > { %s6027_s10 = smov 128   ;;  %s6028_s30 = smov 8  }
  0x41   : > { %5309 = dma.hbm_to_vmem [thread:$0]  (!%p6124_p6), %s6472_s3, 32768, %s6128_s14, [#allocation10], %s6027_s10, %s6027_s10, %s6028_s30  }
  0x42   : > { %s6029_s17 = smov [#allocation8]   ;;  %s6030_s19 = smov [#allocation11]  }
  0x43   : > { %s257_s18 = sshll.u32 %s6029_s17, 4  ;;  %s283_s21 = sshll.u32 %s6030_s19, 4  ;;  %s258_s18 = int_to_ptr.vmem [resolvable:$true] %s257_s18  ;;  %s6183_s21 = int_to_ptr.vmem [resolvable:$true] %s283_s21 }
  0x44   : > { %s6490_s2 = sld [smem:[#allocation18_spill]] }
  0x4a   : > { %s5845_s11 = scalar_lea.hbm %s6490_s2, 256 }
  0x4b   : > { %p5846_p11 = scmp.ne.s32.totalorder %s6490_s2, %s5845_s11  ;;  %p5852_p0 = scmp.lt.u32.totalorder %s5845_s11, %s6490_s2 }
  0x4d   : > { %p5848_p12 = pnand %p5846_p11, %p6138_p8 }
  0x4f   : > { %p5849_p13 = pneg %p5848_p12 }
  0x51   : > { %p5854_p2 = pnand %p5852_p0, %p5849_p13 }
  0x53   : > { %5857 = shalt.err (!%p5854_p2)
}
  0x54   : > { %s5858_s10 = scalar_lea.vmem %s258_s18, 256  ;;  %p5866_p5 = scmp.lt.s32.totalorder %s258_s18, %s258_s18 }
  0x55   : > { %p5859_p4 = scmp.ne.s32.totalorder %s258_s18, %s5858_s10  ;;  %p5867_p10 = scmp.lt.s32.totalorder %s5858_s10, %s5858_s10 }
  0x57   : > { %p5861_p7 = pnand %p5859_p4, %p6138_p8  ;;  %p5868_p3 = por %p5867_p10, %p5866_p5 }
  0x59   : > { %p5862_p9 = pneg %p5861_p7 }
  0x5b   : > { %p5869_p1 = pnand %p5868_p3, %p5862_p9 }
  0x5d   : > { %5872 = shalt.err (!%p5869_p1)
}
  0x5e   : > { %5306 = dma.hbm_to_vmem [thread:$0]  (!%p6124_p6), %s6490_s2, 256, %s258_s18, [#allocation7]  }
  0x5f   : > { %s5873_s17 = scalar_lea.hbm %s6474_s5, 2048 }
  0x60   : > { %p5874_p11 = scmp.ne.s32.totalorder %s6474_s5, %s5873_s17  ;;  %p5880_p1 = scmp.lt.u32.totalorder %s5873_s17, %s6474_s5 }
  0x62   : > { %p5876_p12 = pnand %p5874_p11, %p6138_p8 }
  0x64   : > { %p5877_p13 = pneg %p5876_p12 }
  0x66   : > { %p5882_p3 = pnand %p5880_p1, %p5877_p13 }
  0x68   : > { %5885 = shalt.err (!%p5882_p3)
}
  0x69   : > { %s5886_s18 = scalar_lea.vmem %s6183_s21, 2048  ;;  %p5894_p7 = scmp.lt.s32.totalorder %s6183_s21, %s6183_s21 }
  0x6a   : > { %p5887_p0 = scmp.ne.s32.totalorder %s6183_s21, %s5886_s18  ;;  %p5895_p9 = scmp.lt.s32.totalorder %s5886_s18, %s5886_s18 }
  0x6c   : > { %p5889_p2 = pnand %p5887_p0, %p6138_p8  ;;  %p5896_p5 = por %p5895_p9, %p5894_p7 }
  0x6e   : > { %p5890_p4 = pneg %p5889_p2 }
  0x70   : > { %p5897_p10 = pnand %p5896_p5, %p5890_p4 }
  0x72   : > { %5900 = shalt.err (!%p5897_p10)
}
  0x73   : > { %s6031_s15 = smov 4   ;;  %s6491_s14 = smov 64  }
  0x74   : > { %5312 = dma.hbm_to_vmem [thread:$0]  (!%p6124_p6), %s6474_s5, 2048, %s6183_s21, [#allocation10], %s6491_s14, %s6491_s14, %s6031_s15  }
  0x75   : > { %s4677_s12 = sadd.s32 4294967294, %s6021_s29   ;;  %s37_s20 = sadd.s32 1, %s6017_s28 }
  0x76   : > { %s46_s13 = sadd.s32 1, %s6009_s26  ;;  %p39_p8 = scmp.ge.s32.totalorder %s37_s20, 2 }
  0x77   : > { %p53_p11 = scmp.ne.s32.totalorder %s6009_s26, %s6005_s25  ;;  %p54_p12 = scmp.eq.s32.totalorder %s6021_s29, 0 }
  0x78   : > { %p59_p13 = scmp.ne.s32.totalorder %s6005_s25, %s6001_s24  ;;  %s6510_s20 = smov (%p39_p8, %s37_s20), 0 }
  0x79   : > { %p6238_p1 = por %p54_p12, %p53_p11  ;;  %p6493_p3 = scmp.ne.s32.totalorder %s6485_s8, 0 }
  0x7a   : > { %s41_s16 = ssub.s32 %s6017_s28, %s6510_s20  ;;  %s6495_s17 = sadd.s32 4294967295, %s6021_s29  }
  0x7b   : > { %p6244_p6 = por %p6493_p3, %p59_p13  ;;  %p214_p0 = scmp.eq.s32.totalorder %s6495_s17, 1 }
  0x7c   : > { %p44_p2 = scmp.eq.s32.totalorder %s41_s16, 0  ;;  %p220_p4 = scmp.eq.s32.totalorder %s4677_s12, 1 }
  0x7d   : > { %p6252_p7 = por %p214_p0, %p53_p11  ;;  %p5325_p9 = scmp.lt.s32.totalorder %s6021_s29, 2 }
  0x7e   : > { %s6258_s22 = scalar_select %p44_p2, %s6009_s26, %s46_s13  }
  0x7f   : > { %s6496_s19 = scalar_select %p6252_p7, 1, 0 }
  0x80   : > { %p6260_p5 = por %p220_p4, %p59_p13  ;;  %s300_s11 = sand.u32 1, %s6009_s26  }
  0x81   : > { %s4684_s18 = sshll.u32 %s300_s11, 4  ;;  %s5227_s15 = sshll.u32 %s6017_s28, 8 }
  0x82   : > { %s6497_s23 = scalar_select %p6260_p5, 1, 0 }
  0x83   : > { %s6269_s1 = scalar_lea.hbm %s6469_s0, %s5227_s15  ;;  %s304_s12 = scalar_lea.vmem [#allocation3], %s4684_s18 }
  0x84   : > { %s314_s16 = sshll.u32 %s304_s12, 4  ;;  %p6275_p10 = pnand %p5325_p9, %p6238_p1  ;;  %s6271_s16 = int_to_ptr.vmem [resolvable:$true] %s314_s16 }
  0x85   : > { %s301_s17 = scalar_lea.sflag [#allocation4], %s300_s11  ;;  %s5901_s2 = scalar_lea.hbm %s6269_s1, 256 }
  0x86   : > { %p5902_p8 = scmp.ne.s32.totalorder %s6269_s1, %s5901_s2  ;;  %p5903_p11 = pneg %p6275_p10 }
  0x87   : > { %s5906_s14 = scalar_lea.hbm %s6469_s0, 512  ;;  %p5907_p1 = scmp.lt.u32.totalorder %s6269_s1, %s6469_s0 }
  0x88   : > { %p5904_p12 = pnand %p5903_p11, %p5902_p8  ;;  %p5908_p3 = scmp.lt.u32.totalorder %s5906_s14, %s5901_s2 }
  0x89   : > { %p5910_p2 = scmp.lt.u32.totalorder %s5901_s2, %s6269_s1 }
  0x8a   : > { %p5905_p13 = pneg %p5904_p12  ;;  %p5909_p0 = por %p5908_p3, %p5907_p1 }
  0x8c   : > { %p5911_p4 = por %p5910_p2, %p5909_p0 }
  0x8e   : > { %p5912_p9 = pnand %p5911_p4, %p5905_p13 }
  0x90   : > { %5915 = shalt.err (!%p5912_p9)
}
  0x91   : > { %s5916_s11 = scalar_lea.vmem %s6271_s16, 256  ;;  %s6032_s12 = smov [#allocation3]  }
  0x92   : > { %p5917_p8 = scmp.ne.s32.totalorder %s6271_s16, %s5916_s11  ;;  %s5921_s18 = sshll.u32 %s6032_s12, 4  ;;  %s5922_s18 = int_to_ptr.vmem [resolvable:$false] %s5921_s18 }
  0x93   : > { %s5923_s15 = scalar_lea.vmem %s5922_s18, 512  ;;  %p5924_p7 = scmp.lt.s32.totalorder %s6271_s16, %s5922_s18 }
  0x94   : > { %p5919_p12 = pnand %p5917_p8, %p5903_p11  ;;  %p5925_p1 = scmp.lt.s32.totalorder %s5923_s15, %s5916_s11 }
  0x96   : > { %p5920_p5 = pneg %p5919_p12  ;;  %p5926_p3 = por %p5925_p1, %p5924_p7 }
  0x98   : > { %p5927_p0 = pnand %p5926_p3, %p5920_p5 }
  0x9a   : > { %5930 = shalt.err (!%p5927_p0)
}
  0x9b   : > { %5316 = dma.hbm_to_vmem [thread:$0]  (!%p6275_p10), %s6269_s1, 256, %s6271_s16, %s301_s17  }
  0x9c   : > { %p6499_p13 = scmp.ne.s32.totalorder %s6486_s9, 0 }
  0x9d   : > { %s6307_s2 = sand.u32 (!%p6499_p13), 1, %s6005_s25  }
  0x9e   : > { %323 = sbr.rel (%p6499_p13) target bundleno = 1362 (0x552), region = 48  ;;  %s4688_s14 = sshll.u32 (!%p6499_p13), %s6307_s2, 4 }
  0x9f   : > { %s326_s30 = scalar_lea.sflag (!%p6499_p13), [#allocation4], %s6307_s2  ;;  %s6311_s10 = scalar_lea.vmem (!%p6499_p13), [#allocation3], %s4688_s14 }
  0xa5   : > { %5984 = dma.done.wait (%p6244_p6), %s326_s30, 256  }
  0xa6   : > { %5986 = vsyncadd (%p6244_p6), %s326_s30, 4294967040  ;;  %p6500_p7 = scmp.ne.s32.totalorder %s6485_s8, 0 }
  0xa8   : > { %5988 = dma.done.wait (%p6500_p7), [#allocation7], 33024  }
  0xa9   : > { %5990 = vsyncadd (%p6500_p7), [#allocation7], 4294934272 }
  0xaa   : > { %5992 = dma.done.wait (%p6500_p7), [#allocation10], 34816  }
  0xab   : > { %5994 = vsyncadd (%p6500_p7), [#allocation10], 4294932480  ;;  %v420_v0 = vld [vmem:[#allocation6] sm:$0xff]  ;;  %v401_v17 = vld [vmem:[%s6311_s10 + $0x8] sm:$0xff]  ;;  %s4693_s21 = sshll.u32 %s6307_s2, 3  ;;  %s5224_s13 = sshll.u32 %s6013_s27, 7 }
  0xac   : > { %v428_v1 = vld [vmem:[#allocation6 + $0x40] sm:$0xff]  ;;  %v6326_v18 = vpack.c.bf16 %v401_v17, %v401_v17  ;;  %s375_s17 = scalar_lea.vmem [#allocation12], %s4693_s21  ;;  %s6420_s15 = scalar_lea.hbm %s6476_s7, %s5224_s13 }
  0xad   : > { %v436_v2 = vld [vmem:[#allocation6 + $0x80] sm:$0xff]  ;;  %v4695_v3 = vcombine.high %v420_v0, %v428_v1  ;;  %v4694_v4 = vcombine.low %v420_v0, %v428_v1  ;;  %v421_v0 = vld [vmem:[#allocation6 + $0x8] sm:$0xff]  ;;  %s4555_s11 = sshll.u32 %s375_s17, 4  ;;  %s4542_s14 = scalar_lea.sflag [#allocation5], %s6307_s2  ;;  %s6422_s11 = int_to_ptr.vmem [resolvable:$true] %s4555_s11 }
  0xae   : > { %v444_v5 = vld [vmem:[#allocation6 + $0xc0] sm:$0xff]  ;;  %1988 = vmatprep.mubr.bf16.mxu1 %v6326_v18  ;;  %v429_v1 = vld [vmem:[#allocation6 + $0x48] sm:$0xff]  ;;  %s5931_s30 = scalar_lea.vmem %s6422_s11, 128  ;;  %p6501_p5 = scmp.ne.s32.totalorder %s6496_s19, 0 }
  0xaf   : > { %v4711_v6 = vcombine.high %v436_v2, %v444_v5  ;;  %v452_v7 = vld [vmem:[#allocation6 + $0x100] sm:$0xff]  ;;  %1956 = vmatprep.subr.bf16.mxu1 %v4695_v3  ;;  %v4710_v9 = vcombine.low %v436_v2, %v444_v5  ;;  %v437_v5 = vld [vmem:[#allocation6 + $0x88] sm:$0xff]  ;;  %p5932_p6 = scmp.ne.s32.totalorder %s6422_s11, %s5931_s30  ;;  %s6033_s27 = smov [#allocation12]  }
  0xb0   : > { %v460_v8 = vld [vmem:[#allocation6 + $0x140] sm:$0xff]  ;;  %1957 = vmatpush1.bf16.msra.mxu1 %v4694_v4 }
  0xb1   : > { %1958 = vmatprep.subr.bf16.mxu1 %v4711_v6  ;;  %v4727_v10 = vcombine.high %v452_v7, %v460_v8  ;;  %v468_v11 = vld [vmem:[#allocation6 + $0x180] sm:$0xff]  ;;  %v4726_v13 = vcombine.low %v452_v7, %v460_v8  ;;  %v445_v6 = vld [vmem:[#allocation6 + $0xc8] sm:$0xff]  ;;  %v4697_v7 = vcombine.high %v421_v0, %v429_v1  ;;  %p5933_p10 = pnand %p5932_p6, %p6501_p5 }
  0xb2   : > { %v476_v12 = vld [vmem:[#allocation6 + $0x1c0] sm:$0xff] }
  0xb3   : > { %v4743_v14 = vcombine.high %v468_v11, %v476_v12  ;;  %v484_v15 = vld [vmem:[#allocation6 + $0x200] sm:$0xff]  ;;  %v4742_v19 = vcombine.low %v468_v11, %v476_v12  ;;  %v461_v11 = vld [vmem:[#allocation6 + $0x148] sm:$0xff]  ;;  %v4713_v12 = vcombine.high %v437_v5, %v445_v6  ;;  %p5934_p11 = pneg %p5933_p10 }
  0xb4   : > { %1959 = vmatpush1.bf16.msra.mxu1 %v4710_v9  ;;  %v492_v16 = vld [vmem:[#allocation6 + $0x240] sm:$0xff]  ;;  %v4696_v9 = vcombine.low %v421_v0, %v429_v1 }
  0xb5   : > { %1960 = vmatprep.subr.bf16.mxu1 %v4727_v10  ;;  %v4759_v20 = vcombine.high %v484_v15, %v492_v16  ;;  %v500_v21 = vld [vmem:[#allocation6 + $0x280] sm:$0xff]  ;;  %v4758_v23 = vcombine.low %v484_v15, %v492_v16  ;;  %v453_v10 = vld [vmem:[#allocation6 + $0x108] sm:$0xff] }
  0xb6   : > { %v508_v22 = vld [vmem:[#allocation6 + $0x2c0] sm:$0xff]  ;;  %v477_v15 = vld [vmem:[#allocation6 + $0x1c8] sm:$0xff]  ;;  %v4729_v16 = vcombine.high %v453_v10, %v461_v11  ;;  %v4728_v17 = vcombine.low %v453_v10, %v461_v11 }
  0xb7   : > { %v4775_v24 = vcombine.high %v500_v21, %v508_v22  ;;  %v516_v25 = vld [vmem:[#allocation6 + $0x300] sm:$0xff]  ;;  %v4774_v27 = vcombine.low %v500_v21, %v508_v22  ;;  %v661_v11 = vld [vmem:[#allocation6 + $0x788] sm:$0xff] }
  0xb8   : > { %1961 = vmatpush1.bf16.msra.mxu1 %v4726_v13  ;;  %v524_v26 = vld [vmem:[#allocation6 + $0x340] sm:$0xff]  ;;  %v4712_v13 = vcombine.low %v437_v5, %v445_v6  ;;  %v653_v5 = vld [vmem:[#allocation6 + $0x748] sm:$0xff]  ;;  %v5402_v6 = vld [vmem:[#allocation9 + $0x40] ss:$8 sps:$4 sm:$0xff]  }
  0xb9   : > { %1962 = vmatprep.subr.bf16.mxu1 %v4743_v14  ;;  %v4791_v28 = vcombine.high %v516_v25, %v524_v26  ;;  %v532_v29 = vld [vmem:[#allocation6 + $0x380] sm:$0xff]  ;;  %v4790_v31 = vcombine.low %v516_v25, %v524_v26  ;;  %v469_v14 = vld [vmem:[#allocation6 + $0x188] sm:$0xff] }
  0xba   : > { %v540_v30 = vld [vmem:[#allocation6 + $0x3c0] sm:$0xff]  ;;  %v4745_v21 = vcombine.high %v469_v14, %v477_v15  ;;  %v4744_v22 = vcombine.low %v469_v14, %v477_v15  ;;  %v5406_v15 = vld [vmem:[#allocation9 + $0x64] ss:$8 sps:$4 sm:$0xff]  }
  0xbb   : > { %v4807_v32 = vcombine.high %v532_v29, %v540_v30  ;;  %v548_v33 = vld [vmem:[#allocation6 + $0x400] sm:$0xff]  ;;  %v4806_v35 = vcombine.low %v532_v29, %v540_v30 }
  0xbc   : > { %1963 = vmatpush1.bf16.msra.mxu1 %v4742_v19  ;;  %v556_v34 = vld [vmem:[#allocation6 + $0x440] sm:$0xff]  ;;  %v485_v19 = vld [vmem:[#allocation6 + $0x208] sm:$0xff] }
  0xbd   : > { %1964 = vmatprep.subr.bf16.mxu1 %v4759_v20  ;;  %v564_v36 = vld [vmem:[#allocation6 + $0x480] sm:$0xff]  ;;  %v4823_v38 = vcombine.high %v548_v33, %v556_v34  ;;  %v4822_v39 = vcombine.low %v548_v33, %v556_v34  ;;  %v493_v20 = vld [vmem:[#allocation6 + $0x248] sm:$0xff] }
  0xbe   : > { %v572_v37 = vld [vmem:[#allocation6 + $0x4c0] sm:$0xff]  ;;  %v4761_v25 = vcombine.high %v485_v19, %v493_v20  ;;  %v4760_v26 = vcombine.low %v485_v19, %v493_v20  ;;  %v430_v19 = vld [vmem:[#allocation6 + $0x50] sm:$0xff] }
  0xbf   : > { %v580_v40 = vld [vmem:[#allocation6 + $0x500] sm:$0xff]  ;;  %v4839_v42 = vcombine.high %v564_v36, %v572_v37  ;;  %v4838_v43 = vcombine.low %v564_v36, %v572_v37  ;;  %v557_v36 = vld [vmem:[#allocation6 + $0x448] sm:$0xff]  ;;  %v5408_v20 = vld [vmem:[#allocation9 + $0x60] ss:$8 sps:$4 sm:$0xff]  }
  0xc0   : > { %1965 = vmatpush1.bf16.msra.mxu1 %v4758_v23  ;;  %v588_v41 = vld [vmem:[#allocation6 + $0x540] sm:$0xff]  ;;  %v501_v23 = vld [vmem:[#allocation6 + $0x288] sm:$0xff] }
  0xc1   : > { %1966 = vmatprep.subr.bf16.mxu1 %v4775_v24  ;;  %v596_v44 = vld [vmem:[#allocation6 + $0x580] sm:$0xff]  ;;  %v4855_v46 = vcombine.high %v580_v40, %v588_v41  ;;  %v4854_v47 = vcombine.low %v580_v40, %v588_v41  ;;  %v509_v24 = vld [vmem:[#allocation6 + $0x2c8] sm:$0xff] }
  0xc2   : > { %v604_v45 = vld [vmem:[#allocation6 + $0x5c0] sm:$0xff]  ;;  %v4777_v29 = vcombine.high %v501_v23, %v509_v24  ;;  %v4776_v30 = vcombine.low %v501_v23, %v509_v24  ;;  %v573_v40 = vld [vmem:[#allocation6 + $0x4c8] sm:$0xff]  ;;  %v438_v24 = vld [vmem:[#allocation6 + $0x90] sm:$0xff] }
  0xc3   : > { %v612_v48 = vld [vmem:[#allocation6 + $0x600] sm:$0xff]  ;;  %v4871_v50 = vcombine.high %v596_v44, %v604_v45  ;;  %v4870_v51 = vcombine.low %v596_v44, %v604_v45  ;;  %v581_v44 = vld [vmem:[#allocation6 + $0x508] sm:$0xff] }
  0xc4   : > { %1967 = vmatpush1.bf16.msra.mxu1 %v4774_v27  ;;  %v620_v49 = vld [vmem:[#allocation6 + $0x640] sm:$0xff]  ;;  %v517_v27 = vld [vmem:[#allocation6 + $0x308] sm:$0xff] }
  0xc5   : > { %1968 = vmatprep.subr.bf16.mxu1 %v4791_v28  ;;  %v628_v52 = vld [vmem:[#allocation6 + $0x680] sm:$0xff]  ;;  %v4887_v54 = vcombine.high %v612_v48, %v620_v49  ;;  %v4886_v55 = vcombine.low %v612_v48, %v620_v49  ;;  %v525_v28 = vld [vmem:[#allocation6 + $0x348] sm:$0xff] }
  0xc6   : > { %v636_v53 = vld [vmem:[#allocation6 + $0x6c0] sm:$0xff]  ;;  %v4793_v33 = vcombine.high %v517_v27, %v525_v28  ;;  %v4792_v34 = vcombine.low %v517_v27, %v525_v28  ;;  %v589_v45 = vld [vmem:[#allocation6 + $0x548] sm:$0xff]  ;;  %v5412_v28 = vld [vmem:[#allocation9 + $0x84] ss:$8 sps:$4 sm:$0xff]  }
  0xc7   : > { %v644_v56 = vld [vmem:[#allocation6 + $0x700] sm:$0xff]  ;;  %v4903_v58 = vcombine.high %v628_v52, %v636_v53  ;;  %v4902_v59 = vcombine.low %v628_v52, %v636_v53  ;;  %v4857_v53 = vcombine.high %v581_v44, %v589_v45 }
  0xc8   : > { %1969 = vmatpush1.bf16.msra.mxu1 %v4790_v31  ;;  %v652_v57 = vld [vmem:[#allocation6 + $0x740] sm:$0xff]  ;;  %v533_v31 = vld [vmem:[#allocation6 + $0x388] sm:$0xff] }
  0xc9   : > { %1970 = vmatprep.subr.bf16.mxu1 %v4807_v32  ;;  %v660_v60 = vld [vmem:[#allocation6 + $0x780] sm:$0xff]  ;;  %v4919_v62 = vcombine.high %v644_v56, %v652_v57  ;;  %v4918_v63 = vcombine.low %v644_v56, %v652_v57  ;;  %v541_v32 = vld [vmem:[#allocation6 + $0x3c8] sm:$0xff] }
  0xca   : > { %v668_v61 = vld [vmem:[#allocation6 + $0x7c0] sm:$0xff]  ;;  %v4809_v37 = vcombine.high %v533_v31, %v541_v32  ;;  %v613_v56 = vld [vmem:[#allocation6 + $0x608] sm:$0xff] }
  0xcb   : > { %v4935_v2 = vcombine.high %v660_v60, %v668_v61  ;;  %v400_v3 = vld [vmem:[%s6311_s10] sm:$0xff]  ;;  %v4934_v4 = vcombine.low %v660_v60, %v668_v61  ;;  %v621_v57 = vld [vmem:[#allocation6 + $0x648] sm:$0xff]  ;;  %s5935_s10 = sshll.u32 %s6033_s27, 4  ;;  %s5936_s10 = int_to_ptr.vmem [resolvable:$false] %s5935_s10 }
  0xcc   : > { %1971 = vmatpush1.bf16.msra.mxu1 %v4806_v35  ;;  %v6330_v8 = vpack.c.bf16 %v400_v3, %v400_v3  ;;  %v549_v35 = vld [vmem:[#allocation6 + $0x408] sm:$0xff]  ;;  %v4889_v1 = vcombine.high %v613_v56, %v621_v57  ;;  %v4888_v3 = vcombine.low %v613_v56, %v621_v57  ;;  %v526_v57 = vld [vmem:[#allocation6 + $0x350] sm:$0xff]  ;;  %s5937_s8 = scalar_lea.vmem %s5936_s10, 256  ;;  %p5938_p2 = scmp.lt.s32.totalorder %s6422_s11, %s5936_s10 }
  0xcd   : > { %1972 = vmatprep.subr.bf16.mxu1 %v4823_v38  ;;  %v4808_v38 = vcombine.low %v533_v31, %v541_v32  ;;  %v4825_v41 = vcombine.high %v549_v35, %v557_v36  ;;  %v5391_v48 = vld [vmem:[#allocation9 + $0x14] ss:$8 sps:$4 sm:$0xff]   ;;  %v5393_v52 = vld [vmem:[#allocation9 + $0x10] ss:$8 sps:$4 sm:$0xff]   ;;  %v462_v31 = vld [vmem:[#allocation6 + $0x150] sm:$0xff]  ;;  %p5939_p4 = scmp.lt.s32.totalorder %s5937_s8, %s5931_s30 }
  0xce   : > { %v5397_v60 = vld [vmem:[#allocation9 + $0x34] ss:$8 sps:$4 sm:$0xff]   ;;  %v5399_v0 = vld [vmem:[#allocation9 + $0x30] ss:$8 sps:$4 sm:$0xff]   ;;  %v5414_v32 = vld [vmem:[#allocation9 + $0x80] ss:$8 sps:$4 sm:$0xff]  }
  0xcf   : > { %p5940_p9 = por %p5939_p4, %p5938_p2 }
  0xd0   : > { %1973 = vmatpush1.bf16.msra.mxu1 %v4822_v39  ;;  %v565_v39 = vld [vmem:[#allocation6 + $0x488] sm:$0xff] }
  0xd1   : > { %1974 = vmatprep.subr.bf16.mxu1 %v4839_v42  ;;  %v5388_v42 = vld [vmem:[#allocation9 + $0x4] ss:$8 sps:$4 sm:$0xff]   ;;  %v4840_v49 = vcombine.low %v565_v39, %v573_v40  ;;  %p5941_p8 = pnand %p5940_p9, %p5934_p11 }
  0xd2   : > { %4031 = vmatprep.subr.bf16.mxu0 %v5388_v42  ;;  %v486_v42 = vld [vmem:[#allocation6 + $0x210] sm:$0xff] }
  0xd4   : > { %1975 = vmatpush1.bf16.msra.mxu1 %v4838_v43  ;;  %v4824_v43 = vcombine.low %v549_v35, %v557_v36  ;;  %v470_v36 = vld [vmem:[#allocation6 + $0x190] sm:$0xff] }
  0xd5   : > { %1976 = vmatprep.subr.bf16.mxu1 %v4855_v46  ;;  %v5390_v46 = vld [vmem:[#allocation9] ss:$8 sps:$4 sm:$0xff]  }
  0xd6   : > { %4032 = vmatpush1.bf16.msra.mxu0 %v5390_v46  ;;  %v5421_v46 = vld [vmem:[#allocation9 + $0xb4] ss:$8 sps:$4 sm:$0xff]  }
  0xd7   : > { %4033 = vmatprep.subr.bf16.mxu0 %v5391_v48  ;;  %v502_v48 = vld [vmem:[#allocation6 + $0x290] sm:$0xff] }
  0xd8   : > { %1977 = vmatpush1.bf16.msra.mxu1 %v4854_v47  ;;  %v4841_v47 = vcombine.high %v565_v39, %v573_v40  ;;  %v5418_v40 = vld [vmem:[#allocation9 + $0xa4] ss:$8 sps:$4 sm:$0xff]  }
  0xd9   : > { %1978 = vmatprep.subr.bf16.mxu1 %v4871_v50  ;;  %v597_v50 = vld [vmem:[#allocation6 + $0x588] sm:$0xff] }
  0xda   : > { %4034 = vmatpush1.bf16.msra.mxu0 %v5393_v52  ;;  %v5424_v52 = vld [vmem:[#allocation9 + $0xc4] ss:$8 sps:$4 sm:$0xff]  }
  0xdc   : > { %1979 = vmatpush1.bf16.msra.mxu1 %v4870_v51  ;;  %v605_v51 = vld [vmem:[#allocation6 + $0x5c8] sm:$0xff] }
  0xdd   : > { %1980 = vmatprep.subr.bf16.mxu1 %v4887_v54  ;;  %v5394_v54 = vld [vmem:[#allocation9 + $0x24] ss:$8 sps:$4 sm:$0xff]   ;;  %v4872_v61 = vcombine.low %v597_v50, %v605_v51 }
  0xde   : > { %4035 = vmatprep.subr.bf16.mxu0 %v5394_v54  ;;  %v518_v54 = vld [vmem:[#allocation6 + $0x310] sm:$0xff] }
  0xe0   : > { %1981 = vmatpush1.bf16.msra.mxu1 %v4886_v55  ;;  %v4856_v55 = vcombine.low %v581_v44, %v589_v45  ;;  %v5420_v44 = vld [vmem:[#allocation9 + $0xa0] ss:$8 sps:$4 sm:$0xff]  }
  0xe1   : > { %1982 = vmatprep.subr.bf16.mxu1 %v4903_v58  ;;  %v5396_v58 = vld [vmem:[#allocation9 + $0x20] ss:$8 sps:$4 sm:$0xff]  }
  0xe2   : > { %4036 = vmatpush1.bf16.msra.mxu0 %v5396_v58  ;;  %v5427_v58 = vld [vmem:[#allocation9 + $0xd4] ss:$8 sps:$4 sm:$0xff]  }
  0xe3   : > { %4037 = vmatprep.subr.bf16.mxu0 %v5397_v60  ;;  %v534_v60 = vld [vmem:[#allocation6 + $0x390] sm:$0xff] }
  0xe4   : > { %1983 = vmatpush1.bf16.msra.mxu1 %v4902_v59  ;;  %v4873_v59 = vcombine.high %v597_v50, %v605_v51  ;;  %v5423_v50 = vld [vmem:[#allocation9 + $0xb0] ss:$8 sps:$4 sm:$0xff]  }
  0xe5   : > { %1984 = vmatprep.subr.bf16.mxu1 %v4919_v62  ;;  %v629_v62 = vld [vmem:[#allocation6 + $0x688] sm:$0xff] }
  0xe6   : > { %4038 = vmatpush1.bf16.msra.mxu0 %v5399_v0  ;;  %v5430_v0 = vld [vmem:[#allocation9 + $0xe4] ss:$8 sps:$4 sm:$0xff]  }
  0xe8   : > { %1985 = vmatpush1.bf16.msra.mxu1 %v4918_v63  ;;  %v637_v63 = vld [vmem:[#allocation6 + $0x6c8] sm:$0xff] }
  0xe9   : > { %1986 = vmatprep.subr.bf16.mxu1 %v4935_v2  ;;  %v5400_v2 = vld [vmem:[#allocation9 + $0x44] ss:$8 sps:$4 sm:$0xff]   ;;  %v4904_v10 = vcombine.low %v629_v62, %v637_v63 }
  0xea   : > { %4039 = vmatprep.subr.bf16.mxu0 %v5400_v2  ;;  %v550_v2 = vld [vmem:[#allocation6 + $0x410] sm:$0xff] }
  0xeb   : > { %4040 = vmatpush1.bf16.msra.mxu0 %v5402_v6  ;;  %v5433_v6 = vld [vmem:[#allocation9 + $0xf4] ss:$8 sps:$4 sm:$0xff]  }
  0xec   : > { %1987 = vmatpush1.bf16.msra.mxu1 %v4934_v4  ;;  %v645_v4 = vld [vmem:[#allocation6 + $0x708] sm:$0xff] }
  0xed   : > { %1997 = vmatprep.subr.bf16.mxu1 %v4697_v7  ;;  %v4905_v7 = vcombine.high %v629_v62, %v637_v63  ;;  %v4921_v14 = vcombine.high %v645_v4, %v653_v5  ;;  %v4795_v62 = vcombine.high %v518_v54, %v526_v57  ;;  %v542_v63 = vld [vmem:[#allocation6 + $0x3d0] sm:$0xff] }
  0xef   : > { %1989 = vmatmul.mubr.bf16.vlgmr.msra.gmra.mrb[0].mxu1 %v6330_v8 }
  0xf0   : > { %1998 = vmatpush1.bf16.msra.mxu1 %v4696_v9  ;;  %2029 = vmatprep.mubr.bf16.mxu1 %v6326_v18  ;;  %v5403_v9 = vld [vmem:[#allocation9 + $0x54] ss:$8 sps:$4 sm:$0xff]  }
  0xf1   : > { %1999 = vmatprep.subr.bf16.mxu1 %v4713_v12  ;;  %v669_v12 = vld [vmem:[#allocation6 + $0x7c8] sm:$0xff]  ;;  %4041 = vmatprep.subr.bf16.mxu0 %v5403_v9 }
  0xf2   : > { %v4936_v23 = vcombine.low %v661_v11, %v669_v12  ;;  %v5435_v9 = vld [vmem:[#allocation9 + $0xf0] ss:$8 sps:$4 sm:$0xff]  }
  0xf4   : > { %2000 = vmatpush1.bf16.msra.mxu1 %v4712_v13  ;;  %v5405_v13 = vld [vmem:[#allocation9 + $0x50] ss:$8 sps:$4 sm:$0xff]  }
  0xf5   : > { %2001 = vmatprep.subr.bf16.mxu1 %v4729_v16  ;;  %4042 = vmatpush1.bf16.msra.mxu0 %v5405_v13  ;;  %v4920_v16 = vcombine.low %v645_v4, %v653_v5  ;;  %v5432_v4 = vld [vmem:[#allocation9 + $0xe0] ss:$8 sps:$4 sm:$0xff]   ;;  %v4811_v5 = vcombine.high %v534_v60, %v542_v63  ;;  %v5438_v13 = vld [vmem:[#allocation9 + $0x104] ss:$8 sps:$4 sm:$0xff]  }
  0xf6   : > { %4043 = vmatprep.subr.bf16.mxu0 %v5406_v15 }
  0xf8   : > { %2002 = vmatpush1.bf16.msra.mxu1 %v4728_v17  ;;  %v422_v17 = vld [vmem:[#allocation6 + $0x10] sm:$0xff] }
  0xf9   : > { %2003 = vmatprep.subr.bf16.mxu1 %v4745_v21  ;;  %v4937_v21 = vcombine.high %v661_v11, %v669_v12  ;;  %4044 = vmatpush1.bf16.msra.mxu0 %v5408_v20  ;;  %v4699_v27 = vcombine.high %v422_v17, %v430_v19  ;;  %v566_v11 = vld [vmem:[#allocation6 + $0x490] sm:$0xff] }
  0xfa   : > { %v574_v12 = vld [vmem:[#allocation6 + $0x4d0] sm:$0xff] }
  0xfb   : > { %v4843_v15 = vcombine.high %v566_v11, %v574_v12 }
  0xfc   : > { %2004 = vmatpush1.bf16.msra.mxu1 %v4744_v22  ;;  %v5409_v22 = vld [vmem:[#allocation9 + $0x74] ss:$8 sps:$4 sm:$0xff]  }
  0xfd   : > { %2005 = vmatprep.subr.bf16.mxu1 %v4761_v25  ;;  %v446_v25 = vld [vmem:[#allocation6 + $0xd0] sm:$0xff]  ;;  %4045 = vmatprep.subr.bf16.mxu0 %v5409_v22 }
  0xfe   : > { %v4714_v35 = vcombine.low %v438_v24, %v446_v25  ;;  %v606_v22 = vld [vmem:[#allocation6 + $0x5d0] sm:$0xff] }
 0x100   : > { %2006 = vmatpush1.bf16.msra.mxu1 %v4760_v26  ;;  %v5411_v26 = vld [vmem:[#allocation9 + $0x70] ss:$8 sps:$4 sm:$0xff]  }
 0x101   : > { %2007 = vmatprep.subr.bf16.mxu1 %v4777_v29  ;;  %4046 = vmatpush1.bf16.msra.mxu0 %v5411_v26  ;;  %v4698_v29 = vcombine.low %v422_v17, %v430_v19  ;;  %v590_v17 = vld [vmem:[#allocation6 + $0x550] sm:$0xff]  ;;  %v4842_v19 = vcombine.low %v566_v11, %v574_v12  ;;  %v559_v11 = vld [vmem:[#allocation6 + $0x458] sm:$0xff] }
 0x102   : > { %4047 = vmatprep.subr.bf16.mxu0 %v5412_v28  ;;  %v622_v26 = vld [vmem:[#allocation6 + $0x650] sm:$0xff] }
 0x104   : > { %2008 = vmatpush1.bf16.msra.mxu1 %v4776_v30  ;;  %v454_v30 = vld [vmem:[#allocation6 + $0x110] sm:$0xff] }
 0x105   : > { %2009 = vmatprep.subr.bf16.mxu1 %v4793_v33  ;;  %v4715_v33 = vcombine.high %v438_v24, %v446_v25  ;;  %4048 = vmatpush1.bf16.msra.mxu0 %v5414_v32  ;;  %v4731_v39 = vcombine.high %v454_v30, %v462_v31  ;;  %v614_v25 = vld [vmem:[#allocation6 + $0x610] sm:$0xff] }
 0x106   : > { %v4891_v28 = vcombine.high %v614_v25, %v622_v26 }
 0x108   : > { %2010 = vmatpush1.bf16.msra.mxu1 %v4792_v34  ;;  %v5415_v34 = vld [vmem:[#allocation9 + $0x94] ss:$8 sps:$4 sm:$0xff]  }
 0x109   : > { %2011 = vmatprep.subr.bf16.mxu1 %v4809_v37  ;;  %v478_v37 = vld [vmem:[#allocation6 + $0x1d0] sm:$0xff]  ;;  %4049 = vmatprep.subr.bf16.mxu0 %v5415_v34 }
 0x10a   : > { %v4747_v45 = vcombine.high %v470_v36, %v478_v37  ;;  %v654_v34 = vld [vmem:[#allocation6 + $0x750] sm:$0xff] }
 0x10c   : > { %2012 = vmatpush1.bf16.msra.mxu1 %v4808_v38  ;;  %v5417_v38 = vld [vmem:[#allocation9 + $0x90] ss:$8 sps:$4 sm:$0xff]  }
 0x10d   : > { %2013 = vmatprep.subr.bf16.mxu1 %v4825_v41  ;;  %4050 = vmatpush1.bf16.msra.mxu0 %v5417_v38  ;;  %v4730_v41 = vcombine.low %v454_v30, %v462_v31  ;;  %v638_v30 = vld [vmem:[#allocation6 + $0x6d0] sm:$0xff]  ;;  %v4890_v31 = vcombine.low %v614_v25, %v622_v26 }
 0x10e   : > { %4051 = vmatprep.subr.bf16.mxu0 %v5418_v40  ;;  %v670_v38 = vld [vmem:[#allocation6 + $0x7d0] sm:$0xff] }
 0x110   : > { %2014 = vmatpush1.bf16.msra.mxu1 %v4824_v43  ;;  %v494_v43 = vld [vmem:[#allocation6 + $0x250] sm:$0xff] }
 0x111   : > { %2015 = vmatprep.subr.bf16.mxu1 %v4841_v47  ;;  %4052 = vmatpush1.bf16.msra.mxu0 %v5420_v44  ;;  %v4746_v47 = vcombine.low %v470_v36, %v478_v37  ;;  %v4763_v51 = vcombine.high %v486_v42, %v494_v43  ;;  %v662_v37 = vld [vmem:[#allocation6 + $0x790] sm:$0xff] }
 0x112   : > { %4053 = vmatprep.subr.bf16.mxu0 %v5421_v46  ;;  %v4939_v40 = vcombine.high %v662_v37, %v670_v38  ;;  %v447_v46 = vld [vmem:[#allocation6 + $0xd8] sm:$0xff] }
 0x114   : > { %2016 = vmatpush1.bf16.msra.mxu1 %v4840_v49  ;;  %v510_v49 = vld [vmem:[#allocation6 + $0x2d0] sm:$0xff] }
 0x115   : > { %2017 = vmatprep.subr.bf16.mxu1 %v4857_v53  ;;  %4054 = vmatpush1.bf16.msra.mxu0 %v5423_v50  ;;  %v4762_v53 = vcombine.low %v486_v42, %v494_v43  ;;  %v4779_v56 = vcombine.high %v502_v48, %v510_v49  ;;  %v431_v42 = vld [vmem:[#allocation6 + $0x58] sm:$0xff]  ;;  %v4938_v43 = vcombine.low %v662_v37, %v670_v38 }
 0x116   : > { %4055 = vmatprep.subr.bf16.mxu0 %v5424_v52  ;;  %v463_v50 = vld [vmem:[#allocation6 + $0x158] sm:$0xff] }
 0x118   : > { %2018 = vmatpush1.bf16.msra.mxu1 %v4856_v55  ;;  %v5426_v55 = vld [vmem:[#allocation9 + $0xc0] ss:$8 sps:$4 sm:$0xff]  }
 0x119   : > { %2019 = vmatprep.subr.bf16.mxu1 %v4873_v59  ;;  %4056 = vmatpush1.bf16.msra.mxu0 %v5426_v55  ;;  %v4778_v59 = vcombine.low %v502_v48, %v510_v49  ;;  %v455_v49 = vld [vmem:[#allocation6 + $0x118] sm:$0xff] }
 0x11a   : > { %4057 = vmatprep.subr.bf16.mxu0 %v5427_v58  ;;  %v4733_v52 = vcombine.high %v455_v49, %v463_v50  ;;  %v4732_v55 = vcombine.low %v455_v49, %v463_v50  ;;  %v495_v58 = vld [vmem:[#allocation6 + $0x258] sm:$0xff] }
 0x11c   : > { %2020 = vmatpush1.bf16.msra.mxu1 %v4872_v61  ;;  %v5429_v61 = vld [vmem:[#allocation9 + $0xd0] ss:$8 sps:$4 sm:$0xff]  }
 0x11d   : > { %2021 = vmatprep.subr.bf16.mxu1 %v4889_v1  ;;  %4058 = vmatpush1.bf16.msra.mxu0 %v5429_v61  ;;  %v4794_v1 = vcombine.low %v518_v54, %v526_v57  ;;  %v479_v54 = vld [vmem:[#allocation6 + $0x1d8] sm:$0xff] }
 0x11e   : > { %4059 = vmatprep.subr.bf16.mxu0 %v5430_v0  ;;  %v487_v57 = vld [vmem:[#allocation6 + $0x218] sm:$0xff] }
 0x11f   : > { %v503_v61 = vld [vmem:[#allocation6 + $0x298] sm:$0xff] }
 0x120   : > { %2022 = vmatpush1.bf16.msra.mxu1 %v4888_v3  ;;  %v558_v3 = vld [vmem:[#allocation6 + $0x450] sm:$0xff] }
 0x121   : > { %2023 = vmatprep.subr.bf16.mxu1 %v4905_v7  ;;  %4060 = vmatpush1.bf16.msra.mxu0 %v5432_v4  ;;  %v4810_v7 = vcombine.low %v534_v60, %v542_v63  ;;  %v4765_v60 = vcombine.high %v487_v57, %v495_v58  ;;  %v4764_v63 = vcombine.low %v487_v57, %v495_v58  ;;  %v2339_v57 = vlaneseq }
 0x122   : > { %4061 = vmatprep.subr.bf16.mxu0 %v5433_v6  ;;  %v543_v6 = vld [vmem:[#allocation6 + $0x3d8] sm:$0xff] }
 0x124   : > { %2024 = vmatpush1.bf16.msra.mxu1 %v4904_v10  ;;  %v4827_v10 = vcombine.high %v550_v2, %v558_v3 }
 0x125   : > { %2025 = vmatprep.subr.bf16.mxu1 %v4921_v14  ;;  %4062 = vmatpush1.bf16.msra.mxu0 %v5435_v9  ;;  %v4826_v14 = vcombine.low %v550_v2, %v558_v3  ;;  %v527_v2 = vld [vmem:[#allocation6 + $0x358] sm:$0xff] }
 0x126   : > { %4072 = vmatprep.subr.bf16.mxu0 %v5438_v13 }
 0x128   : > { %2026 = vmatpush1.bf16.msra.mxu1 %v4920_v16  ;;  %v582_v16 = vld [vmem:[#allocation6 + $0x510] sm:$0xff] }
 0x129   : > { %2027 = vmatprep.subr.bf16.mxu1 %v4937_v21  ;;  %v4859_v20 = vcombine.high %v582_v16, %v590_v17  ;;  %v598_v21 = vld [vmem:[#allocation6 + $0x590] sm:$0xff] }
 0x12a   : > { %v4875_v24 = vcombine.high %v598_v21, %v606_v22 }
 0x12c   : > { %2028 = vmatpush1.bf16.msra.mxu1 %v4936_v23  ;;  %v4858_v23 = vcombine.low %v582_v16, %v590_v17 }
 0x12d   : > { %2038 = vmatprep.subr.bf16.mxu1 %v4699_v27  ;;  %v4874_v27 = vcombine.low %v598_v21, %v606_v22 }
 0x12f   : > { %2030 = vmatmul.mubr.bf16.vlgmr.msra.gmra.mrb[4].mxu1 %v6330_v8 }
 0x130   : > { %2039 = vmatpush1.bf16.msra.mxu1 %v4698_v29  ;;  %2070 = vmatprep.mubr.bf16.mxu1 %v6326_v18  ;;  %v630_v29 = vld [vmem:[#allocation6 + $0x690] sm:$0xff] }
 0x131   : > { %2040 = vmatprep.subr.bf16.mxu1 %v4715_v33  ;;  %v4907_v32 = vcombine.high %v630_v29, %v638_v30  ;;  %v646_v33 = vld [vmem:[#allocation6 + $0x710] sm:$0xff] }
 0x132   : > { %v4923_v36 = vcombine.high %v646_v33, %v654_v34 }
 0x134   : > { %2041 = vmatpush1.bf16.msra.mxu1 %v4714_v35  ;;  %v4906_v35 = vcombine.low %v630_v29, %v638_v30 }
 0x135   : > { %2042 = vmatprep.subr.bf16.mxu1 %v4731_v39  ;;  %v4922_v39 = vcombine.low %v646_v33, %v654_v34 }
 0x138   : > { %2043 = vmatpush1.bf16.msra.mxu1 %v4730_v41  ;;  %v423_v41 = vld [vmem:[#allocation6 + $0x18] sm:$0xff] }
 0x139   : > { %2044 = vmatprep.subr.bf16.mxu1 %v4747_v45  ;;  %v4701_v44 = vcombine.high %v423_v41, %v431_v42  ;;  %v439_v45 = vld [vmem:[#allocation6 + $0x98] sm:$0xff] }
 0x13a   : > { %v4717_v48 = vcombine.high %v439_v45, %v447_v46 }
 0x13c   : > { %2045 = vmatpush1.bf16.msra.mxu1 %v4746_v47  ;;  %v4700_v47 = vcombine.low %v423_v41, %v431_v42 }
 0x13d   : > { %2046 = vmatprep.subr.bf16.mxu1 %v4763_v51  ;;  %v4716_v51 = vcombine.low %v439_v45, %v447_v46 }
 0x140   : > { %2047 = vmatpush1.bf16.msra.mxu1 %v4762_v53  ;;  %v471_v53 = vld [vmem:[#allocation6 + $0x198] sm:$0xff] }
 0x141   : > { %2048 = vmatprep.subr.bf16.mxu1 %v4779_v56  ;;  %v4749_v56 = vcombine.high %v471_v53, %v479_v54 }
 0x144   : > { %2049 = vmatpush1.bf16.msra.mxu1 %v4778_v59  ;;  %v4748_v59 = vcombine.low %v471_v53, %v479_v54 }
 0x145   : > { %2050 = vmatprep.subr.bf16.mxu1 %v4795_v62  ;;  %v511_v62 = vld [vmem:[#allocation6 + $0x2d8] sm:$0xff] }
 0x146   : > { %v4781_v0 = vcombine.high %v503_v61, %v511_v62  ;;  %v4780_v3 = vcombine.low %v503_v61, %v511_v62  ;;  %v496_v61 = vld [vmem:[#allocation6 + $0x260] sm:$0xff]  ;;  %v6340_v62 = vshrl.u32 %v2339_v57, 7  ;;  %v5450_v57 = vld [vmem:[#allocation9 + $0x144] ss:$8 sps:$4 sm:$0xff]  }
 0x148   : > { %2051 = vmatpush1.bf16.msra.mxu1 %v4794_v1  ;;  %v519_v1 = vld [vmem:[#allocation6 + $0x318] sm:$0xff] }
 0x149   : > { %2052 = vmatprep.subr.bf16.mxu1 %v4811_v5  ;;  %v4797_v4 = vcombine.high %v519_v1, %v527_v2  ;;  %v535_v5 = vld [vmem:[#allocation6 + $0x398] sm:$0xff] }
 0x14a   : > { %v4813_v9 = vcombine.high %v535_v5, %v543_v6  ;;  %v4812_v12 = vcombine.low %v535_v5, %v543_v6  ;;  %v6345_v5 = vld [vmem:[#allocation8] sm:$0xff]  ;;  %v6348_v6 = vsub.s32 1, %v6340_v62 }
 0x14c   : > { %2053 = vmatpush1.bf16.msra.mxu1 %v4810_v7  ;;  %v4796_v7 = vcombine.low %v519_v1, %v527_v2  ;;  %v504_v1 = vld [vmem:[#allocation6 + $0x2a0] sm:$0xff] }
 0x14d   : > { %2054 = vmatprep.subr.bf16.mxu1 %v4827_v10  ;;  %v551_v10 = vld [vmem:[#allocation6 + $0x418] sm:$0xff]  ;;  %v512_v2 = vld [vmem:[#allocation6 + $0x2e0] sm:$0xff] }
 0x14e   : > { %v4829_v13 = vcombine.high %v551_v10, %v559_v11  ;;  %v4828_v16 = vcombine.low %v551_v10, %v559_v11  ;;  %v528_v10 = vld [vmem:[#allocation6 + $0x360] sm:$0xff] }
 0x150   : > { %2055 = vmatpush1.bf16.msra.mxu1 %v4826_v14  ;;  %v567_v14 = vld [vmem:[#allocation6 + $0x498] sm:$0xff] }
 0x151   : > { %2056 = vmatprep.subr.bf16.mxu1 %v4843_v15  ;;  %v575_v15 = vld [vmem:[#allocation6 + $0x4d8] sm:$0xff] }
 0x152   : > { %v4845_v17 = vcombine.high %v567_v14, %v575_v15  ;;  %v4844_v21 = vcombine.low %v567_v14, %v575_v15 }
 0x154   : > { %2057 = vmatpush1.bf16.msra.mxu1 %v4842_v19  ;;  %v583_v19 = vld [vmem:[#allocation6 + $0x518] sm:$0xff] }
 0x155   : > { %2058 = vmatprep.subr.bf16.mxu1 %v4859_v20  ;;  %v591_v20 = vld [vmem:[#allocation6 + $0x558] sm:$0xff] }
 0x156   : > { %v4861_v22 = vcombine.high %v583_v19, %v591_v20  ;;  %v4860_v25 = vcombine.low %v583_v19, %v591_v20 }
 0x158   : > { %2059 = vmatpush1.bf16.msra.mxu1 %v4858_v23  ;;  %v599_v23 = vld [vmem:[#allocation6 + $0x598] sm:$0xff] }
 0x159   : > { %2060 = vmatprep.subr.bf16.mxu1 %v4875_v24  ;;  %v607_v24 = vld [vmem:[#allocation6 + $0x5d8] sm:$0xff] }
 0x15a   : > { %v4877_v26 = vcombine.high %v599_v23, %v607_v24  ;;  %v4876_v29 = vcombine.low %v599_v23, %v607_v24 }
 0x15c   : > { %2061 = vmatpush1.bf16.msra.mxu1 %v4874_v27  ;;  %v615_v27 = vld [vmem:[#allocation6 + $0x618] sm:$0xff] }
 0x15d   : > { %2062 = vmatprep.subr.bf16.mxu1 %v4891_v28  ;;  %v623_v28 = vld [vmem:[#allocation6 + $0x658] sm:$0xff] }
 0x15e   : > { %v4893_v30 = vcombine.high %v615_v27, %v623_v28  ;;  %v4892_v33 = vcombine.low %v615_v27, %v623_v28  ;;  %v552_v28 = vld [vmem:[#allocation6 + $0x420] sm:$0xff] }
 0x160   : > { %2063 = vmatpush1.bf16.msra.mxu1 %v4890_v31  ;;  %v631_v31 = vld [vmem:[#allocation6 + $0x698] sm:$0xff] }
 0x161   : > { %2064 = vmatprep.subr.bf16.mxu1 %v4907_v32  ;;  %v639_v32 = vld [vmem:[#allocation6 + $0x6d8] sm:$0xff] }
 0x162   : > { %v4909_v34 = vcombine.high %v631_v31, %v639_v32  ;;  %v4908_v37 = vcombine.low %v631_v31, %v639_v32 }
 0x164   : > { %2065 = vmatpush1.bf16.msra.mxu1 %v4906_v35  ;;  %v647_v35 = vld [vmem:[#allocation6 + $0x718] sm:$0xff] }
 0x165   : > { %2066 = vmatprep.subr.bf16.mxu1 %v4923_v36  ;;  %v655_v36 = vld [vmem:[#allocation6 + $0x758] sm:$0xff] }
 0x166   : > { %v4925_v38 = vcombine.high %v647_v35, %v655_v36  ;;  %v4924_v41 = vcombine.low %v647_v35, %v655_v36  ;;  %v5436_v35 = vld [vmem:[#allocation9 + $0x100] ss:$8 sps:$4 sm:$0xff]   ;;  %v568_v36 = vld [vmem:[#allocation6 + $0x4a0] sm:$0xff] }
 0x168   : > { %2067 = vmatpush1.bf16.msra.mxu1 %v4922_v39  ;;  %v663_v39 = vld [vmem:[#allocation6 + $0x798] sm:$0xff] }
 0x169   : > { %2068 = vmatprep.subr.bf16.mxu1 %v4939_v40  ;;  %v671_v40 = vld [vmem:[#allocation6 + $0x7d8] sm:$0xff] }
 0x16a   : > { %v4941_v42 = vcombine.high %v663_v39, %v671_v40  ;;  %v4940_v45 = vcombine.low %v663_v39, %v671_v40  ;;  %v5441_v39 = vld [vmem:[#allocation9 + $0x114] ss:$8 sps:$4 sm:$0xff]  }
 0x16c   : > { %2069 = vmatpush1.bf16.msra.mxu1 %v4938_v43  ;;  %v424_v43 = vld [vmem:[#allocation6 + $0x20] sm:$0xff] }
 0x16d   : > { %2079 = vmatprep.subr.bf16.mxu1 %v4701_v44  ;;  %v432_v44 = vld [vmem:[#allocation6 + $0x60] sm:$0xff] }
 0x16e   : > { %v4703_v46 = vcombine.high %v424_v43, %v432_v44  ;;  %v4702_v49 = vcombine.low %v424_v43, %v432_v44  ;;  %v584_v43 = vld [vmem:[#allocation6 + $0x520] sm:$0xff] }
 0x16f   : > { %2071 = vmatmul.mubr.bf16.vlgmr.msra.gmra.mrb[8].mxu1 %v6330_v8  ;;  %v592_v44 = vld [vmem:[#allocation6 + $0x560] sm:$0xff] }
 0x170   : > { %2080 = vmatpush1.bf16.msra.mxu1 %v4700_v47  ;;  %2111 = vmatprep.mubr.bf16.mxu1 %v6326_v18  ;;  %v440_v47 = vld [vmem:[#allocation6 + $0xa0] sm:$0xff] }
 0x171   : > { %2081 = vmatprep.subr.bf16.mxu1 %v4717_v48  ;;  %v448_v48 = vld [vmem:[#allocation6 + $0xe0] sm:$0xff] }
 0x172   : > { %v4719_v50 = vcombine.high %v440_v47, %v448_v48  ;;  %v4718_v53 = vcombine.low %v440_v47, %v448_v48  ;;  %v4863_v47 = vcombine.high %v584_v43, %v592_v44  ;;  %v5442_v48 = vld [vmem:[#allocation9 + $0x120] ss:$8 sps:$4 sm:$0xff]  }
 0x174   : > { %2082 = vmatpush1.bf16.msra.mxu1 %v4716_v51  ;;  %v456_v51 = vld [vmem:[#allocation6 + $0x120] sm:$0xff] }
 0x175   : > { %2083 = vmatprep.subr.bf16.mxu1 %v4733_v52  ;;  %v464_v52 = vld [vmem:[#allocation6 + $0x160] sm:$0xff] }
 0x176   : > { %v4735_v54 = vcombine.high %v456_v51, %v464_v52  ;;  %v4734_v58 = vcombine.low %v456_v51, %v464_v52  ;;  %v5447_v51 = vld [vmem:[#allocation9 + $0x134] ss:$8 sps:$4 sm:$0xff]   ;;  %v4862_v52 = vcombine.low %v584_v43, %v592_v44  ;;  %v5469_v44 = vld [vmem:[#allocation9 + $0x1b0] ss:$8 sps:$4 sm:$0xff]  }
 0x178   : > { %2084 = vmatpush1.bf16.msra.mxu1 %v4732_v55  ;;  %v472_v55 = vld [vmem:[#allocation6 + $0x1a0] sm:$0xff] }
 0x179   : > { %2085 = vmatprep.subr.bf16.mxu1 %v4749_v56  ;;  %v480_v56 = vld [vmem:[#allocation6 + $0x1e0] sm:$0xff] }
 0x17c   : > { %2086 = vmatpush1.bf16.msra.mxu1 %v4748_v59  ;;  %v4751_v59 = vcombine.high %v472_v55, %v480_v56 }
 0x17d   : > { %2087 = vmatprep.subr.bf16.mxu1 %v4765_v60  ;;  %v488_v60 = vld [vmem:[#allocation6 + $0x220] sm:$0xff] }
 0x180   : > { %2088 = vmatpush1.bf16.msra.mxu1 %v4764_v63  ;;  %v4750_v63 = vcombine.low %v472_v55, %v480_v56  ;;  %v616_v55 = vld [vmem:[#allocation6 + $0x620] sm:$0xff] }
 0x181   : > { %2089 = vmatprep.subr.bf16.mxu1 %v4781_v0  ;;  %v4767_v0 = vcombine.high %v488_v60, %v496_v61  ;;  %v624_v56 = vld [vmem:[#allocation6 + $0x660] sm:$0xff] }
 0x184   : > { %2090 = vmatpush1.bf16.msra.mxu1 %v4780_v3  ;;  %v6343_v3 = vsub.s32 0, %v6340_v62 }
 0x185   : > { %2091 = vmatprep.subr.bf16.mxu1 %v4797_v4  ;;  %v4766_v4 = vcombine.low %v488_v60, %v496_v61  ;;  %v5448_v60 = vld [vmem:[#allocation9 + $0x140] ss:$8 sps:$4 sm:$0xff]   ;;  %v632_v61 = vld [vmem:[#allocation6 + $0x6a0] sm:$0xff] }
 0x186   : > { %v2342_v11 = vrot.slane %v6345_v5, %v6343_v3 }
 0x188   : > { %2092 = vmatpush1.bf16.msra.mxu1 %v4796_v7  ;;  %v4783_v7 = vcombine.high %v504_v1, %v512_v2 }
 0x189   : > { %2093 = vmatprep.subr.bf16.mxu1 %v4813_v9  ;;  %v520_v9 = vld [vmem:[#allocation6 + $0x320] sm:$0xff] }
 0x18a   : > { %v4799_v14 = vcombine.high %v520_v9, %v528_v10  ;;  %v4798_v23 = vcombine.low %v520_v9, %v528_v10  ;;  %v656_v9 = vld [vmem:[#allocation6 + $0x760] sm:$0xff]  ;;  %v5456_v10 = vld [vmem:[#allocation9 + $0x164] ss:$8 sps:$4 sm:$0xff]  }
 0x18c   : > { %2094 = vmatpush1.bf16.msra.mxu1 %v4812_v12  ;;  %v2346_v12 = vrot.slane %v6345_v5, %v6348_v6 }
 0x18d   : > { %2095 = vmatprep.subr.bf16.mxu1 %v4829_v13  ;;  %v4782_v13 = vcombine.low %v504_v1, %v512_v2  ;;  %v4894_v1 = vcombine.low %v616_v55, %v624_v56 }
 0x190   : > { %2096 = vmatpush1.bf16.msra.mxu1 %v4828_v16  ;;  %v536_v16 = vld [vmem:[#allocation6 + $0x3a0] sm:$0xff] }
 0x191   : > { %2097 = vmatprep.subr.bf16.mxu1 %v4845_v17  ;;  %v544_v17 = vld [vmem:[#allocation6 + $0x3e0] sm:$0xff] }
 0x192   : > { %v4814_v31 = vcombine.low %v536_v16, %v544_v17 }
 0x194   : > { %2098 = vmatpush1.bf16.msra.mxu1 %v4844_v21 }
 0x195   : > { %2099 = vmatprep.subr.bf16.mxu1 %v4861_v22 }
 0x198   : > { %2100 = vmatpush1.bf16.msra.mxu1 %v4860_v25 }
 0x199   : > { %2101 = vmatprep.subr.bf16.mxu1 %v4877_v26  ;;  %v4815_v26 = vcombine.high %v536_v16, %v544_v17  ;;  %v5459_v16 = vld [vmem:[#allocation9 + $0x174] ss:$8 sps:$4 sm:$0xff]  }
 0x19c   : > { %2102 = vmatpush1.bf16.msra.mxu1 %v4876_v29  ;;  %v560_v29 = vld [vmem:[#allocation6 + $0x460] sm:$0xff] }
 0x19d   : > { %2103 = vmatprep.subr.bf16.mxu1 %v4893_v30  ;;  %v4830_v40 = vcombine.low %v552_v28, %v560_v29 }
 0x1a0   : > { %2104 = vmatpush1.bf16.msra.mxu1 %v4892_v33  ;;  %v4831_v33 = vcombine.high %v552_v28, %v560_v29  ;;  %v449_v28 = vld [vmem:[#allocation6 + $0xe8] sm:$0xff] }
 0x1a1   : > { %2105 = vmatprep.subr.bf16.mxu1 %v4909_v34  ;;  %v5465_v29 = vld [vmem:[#allocation9 + $0x194] ss:$8 sps:$4 sm:$0xff]  }
 0x1a4   : > { %2106 = vmatpush1.bf16.msra.mxu1 %v4908_v37  ;;  %v576_v37 = vld [vmem:[#allocation6 + $0x4e0] sm:$0xff] }
 0x1a5   : > { %2107 = vmatprep.subr.bf16.mxu1 %v4925_v38 }
 0x1a8   : > { %2108 = vmatpush1.bf16.msra.mxu1 %v4924_v41  ;;  %v4847_v41 = vcombine.high %v568_v36, %v576_v37 }
 0x1a9   : > { %2109 = vmatprep.subr.bf16.mxu1 %v4941_v42  ;;  %v5439_v42 = vld [vmem:[#allocation9 + $0x110] ss:$8 sps:$4 sm:$0xff]  }
 0x1ac   : > { %2110 = vmatpush1.bf16.msra.mxu1 %v4940_v45  ;;  %v5444_v45 = vld [vmem:[#allocation9 + $0x124] ss:$8 sps:$4 sm:$0xff]  }
 0x1ad   : > { %2120 = vmatprep.subr.bf16.mxu1 %v4703_v46  ;;  %v4846_v46 = vcombine.low %v568_v36, %v576_v37 }
 0x1af   : > { %2112 = vmatmul.mubr.bf16.vlgmr.msra.gmra.mrb[12].mxu1 %v6330_v8 }
 0x1b0   : > { %2121 = vmatpush1.bf16.msra.mxu1 %v4702_v49  ;;  %2152 = vmatprep.mubr.bf16.mxu1 %v6326_v18  ;;  %v600_v49 = vld [vmem:[#allocation6 + $0x5a0] sm:$0xff] }
 0x1b1   : > { %2122 = vmatprep.subr.bf16.mxu1 %v4719_v50  ;;  %v608_v50 = vld [vmem:[#allocation6 + $0x5e0] sm:$0xff] }
 0x1b4   : > { %2123 = vmatpush1.bf16.msra.mxu1 %v4718_v53  ;;  %v4879_v53 = vcombine.high %v600_v49, %v608_v50 }
 0x1b5   : > { %2124 = vmatprep.subr.bf16.mxu1 %v4735_v54  ;;  %v5445_v54 = vld [vmem:[#allocation9 + $0x130] ss:$8 sps:$4 sm:$0xff]  }
 0x1b8   : > { %2125 = vmatpush1.bf16.msra.mxu1 %v4734_v58  ;;  %v4878_v58 = vcombine.low %v600_v49, %v608_v50  ;;  %v5472_v50 = vld [vmem:[#allocation9 + $0x1c0] ss:$8 sps:$4 sm:$0xff]  }
 0x1b9   : > { %2126 = vmatprep.subr.bf16.mxu1 %v4751_v59  ;;  %v4895_v59 = vcombine.high %v616_v55, %v624_v56  ;;  %v2353_v56 = vsub.s32 3, %v6340_v62 }
 0x1bc   : > { %2127 = vmatpush1.bf16.msra.mxu1 %v4750_v63  ;;  %v640_v63 = vld [vmem:[#allocation6 + $0x6e0] sm:$0xff] }
 0x1bd   : > { %2128 = vmatprep.subr.bf16.mxu1 %v4767_v0  ;;  %v5453_v0 = vld [vmem:[#allocation9 + $0x154] ss:$8 sps:$4 sm:$0xff]   ;;  %v4911_v2 = vcombine.high %v632_v61, %v640_v63 }
 0x1c0   : > { %2129 = vmatpush1.bf16.msra.mxu1 %v4766_v4  ;;  %v5451_v4 = vld [vmem:[#allocation9 + $0x150] ss:$8 sps:$4 sm:$0xff]  }
 0x1c1   : > { %2130 = vmatprep.subr.bf16.mxu1 %v4783_v7  ;;  %v648_v7 = vld [vmem:[#allocation6 + $0x720] sm:$0xff] }
 0x1c2   : > { %v1990_v15 = vpop.f32.mrb[0].mxu1  ;;  %v4926_v17 = vcombine.low %v648_v7, %v656_v9 }
 0x1c3   : > { %v2419_v19 = vadd.f32 %v2342_v11, %v1990_v15  ;;  %v1992_v20 = vpop.f32.mrb[1].mxu1  ;;  %v4910_v11 = vcombine.low %v632_v61, %v640_v63  ;;  %v672_v15 = vld [vmem:[#allocation6 + $0x7e0] sm:$0xff]  ;;  %v5480_v63 = vld [vmem:[#allocation9 + $0x1e4] ss:$8 sps:$4 sm:$0xff]  }
 0x1c4   : > { %v2420_v21 = vadd.f32 %v2346_v12, %v1992_v20  ;;  %v1994_v22 = vpop.f32.mrb[2].mxu1  ;;  %2131 = vmatpush1.bf16.msra.mxu1 %v4782_v13  ;;  %v4927_v12 = vcombine.high %v648_v7, %v656_v9  ;;  %v5454_v13 = vld [vmem:[#allocation9 + $0x160] ss:$8 sps:$4 sm:$0xff]   ;;  %v5457_v20 = vld [vmem:[#allocation9 + $0x170] ss:$8 sps:$4 sm:$0xff]  }
 0x1c5   : > { %v2435_v24 = vpack.c.bf16 %v2419_v19, %v2419_v19  ;;  %v1995_v25 = vpop.f32.mrb[3].mxu1  ;;  %2132 = vmatprep.subr.bf16.mxu1 %v4799_v14  ;;  %v664_v14 = vld [vmem:[#allocation6 + $0x7a0] sm:$0xff]  ;;  %v433_v22 = vld [vmem:[#allocation6 + $0x68] sm:$0xff]  ;;  %v5478_v7 = vld [vmem:[#allocation9 + $0x1e0] ss:$8 sps:$4 sm:$0xff]  }
 0x1c6   : > { %v2436_v27 = vpack.c.bf16 %v2420_v21, %v2420_v21  ;;  %v4943_v19 = vcombine.high %v664_v14, %v672_v15  ;;  %v425_v21 = vld [vmem:[#allocation6 + $0x28] sm:$0xff] }
 0x1c7   : > { %v2451_v30 = vmul.bf16 1009007652, %v2435_v24  ;;  %v4705_v25 = vcombine.high %v425_v21, %v433_v22  ;;  %v537_v9 = vld [vmem:[#allocation6 + $0x3a8] sm:$0xff] }
 0x1c8   : > { %2133 = vmatpush1.bf16.msra.mxu1 %v4798_v23  ;;  %v2452_v32 = vmul.bf16 1009007652, %v2436_v27  ;;  %v5462_v23 = vld [vmem:[#allocation9 + $0x184] ss:$8 sps:$4 sm:$0xff]  }
 0x1c9   : > { %2134 = vmatprep.subr.bf16.mxu1 %v4815_v26  ;;  %v2467_v38 = vmax.bf16 %v2451_v30, %v2435_v24  ;;  %v4942_v24 = vcombine.low %v664_v14, %v672_v15  ;;  %v5460_v26 = vld [vmem:[#allocation9 + $0x180] ss:$8 sps:$4 sm:$0xff]   ;;  %v4704_v30 = vcombine.low %v425_v21, %v433_v22  ;;  %v5481_v22 = vld [vmem:[#allocation9 + $0x1f0] ss:$8 sps:$4 sm:$0xff]  }
 0x1ca   : > { %v2468_v34 = vmax.bf16 %v2452_v32, %v2436_v27  ;;  %v441_v27 = vld [vmem:[#allocation6 + $0xa8] sm:$0xff] }
 0x1cb   : > { %v5463_v32 = vld [vmem:[#allocation9 + $0x190] ss:$8 sps:$4 sm:$0xff]   ;;  %v4720_v36 = vcombine.low %v441_v27, %v449_v28 }
 0x1cc   : > { %2135 = vmatpush1.bf16.msra.mxu1 %v4814_v31  ;;  %4063 = vmatprep.mubr.bf16.mxu0 %v2468_v34  ;;  %v4721_v31 = vcombine.high %v441_v27, %v449_v28  ;;  %v465_v34 = vld [vmem:[#allocation6 + $0x168] sm:$0xff] }
 0x1cd   : > { %4064 = vmatmul.mubr.bf16.vlgmr.msra.gmra.mrb[0].mxu0 %v2467_v38  ;;  %2136 = vmatprep.subr.bf16.mxu1 %v4831_v33  ;;  %v457_v33 = vld [vmem:[#allocation6 + $0x128] sm:$0xff]  ;;  %v5466_v38 = vld [vmem:[#allocation9 + $0x1a0] ss:$8 sps:$4 sm:$0xff]  }
 0x1ce   : > { %4073 = vmatpush1.bf16.msra.mxu0 %v5436_v35  ;;  %v5468_v35 = vld [vmem:[#allocation9 + $0x1a4] ss:$8 sps:$4 sm:$0xff]   ;;  %v4737_v37 = vcombine.high %v457_v33, %v465_v34 }
 0x1cf   : > { %4074 = vmatprep.subr.bf16.mxu0 %v5441_v39  ;;  %v473_v39 = vld [vmem:[#allocation6 + $0x1a8] sm:$0xff] }
 0x1d0   : > { %2137 = vmatpush1.bf16.msra.mxu1 %v4830_v40  ;;  %v481_v40 = vld [vmem:[#allocation6 + $0x1e8] sm:$0xff] }
 0x1d1   : > { %2138 = vmatprep.subr.bf16.mxu1 %v4847_v41  ;;  %v5471_v41 = vld [vmem:[#allocation9 + $0x1b4] ss:$8 sps:$4 sm:$0xff]   ;;  %v4753_v43 = vcombine.high %v473_v39, %v481_v40 }
 0x1d2   : > { %4075 = vmatpush1.bf16.msra.mxu0 %v5439_v42  ;;  %v4736_v42 = vcombine.low %v457_v33, %v465_v34  ;;  %v577_v33 = vld [vmem:[#allocation6 + $0x4e8] sm:$0xff] }
 0x1d3   : > { %4076 = vmatprep.subr.bf16.mxu0 %v5444_v45  ;;  %v489_v45 = vld [vmem:[#allocation6 + $0x228] sm:$0xff] }
 0x1d4   : > { %2139 = vmatpush1.bf16.msra.mxu1 %v4846_v46  ;;  %v497_v46 = vld [vmem:[#allocation6 + $0x268] sm:$0xff] }
 0x1d5   : > { %2140 = vmatprep.subr.bf16.mxu1 %v4863_v47  ;;  %v5474_v47 = vld [vmem:[#allocation9 + $0x1c4] ss:$8 sps:$4 sm:$0xff]   ;;  %v4769_v49 = vcombine.high %v489_v45, %v497_v46  ;;  %v4768_v55 = vcombine.low %v489_v45, %v497_v46  ;;  %v601_v45 = vld [vmem:[#allocation6 + $0x5a8] sm:$0xff] }
 0x1d6   : > { %4077 = vmatpush1.bf16.msra.mxu0 %v5442_v48  ;;  %v4752_v48 = vcombine.low %v473_v39, %v481_v40  ;;  %v585_v39 = vld [vmem:[#allocation6 + $0x528] sm:$0xff] }
 0x1d7   : > { %4078 = vmatprep.subr.bf16.mxu0 %v5447_v51  ;;  %v505_v51 = vld [vmem:[#allocation6 + $0x2a8] sm:$0xff] }
 0x1d8   : > { %2141 = vmatpush1.bf16.msra.mxu1 %v4862_v52  ;;  %v513_v52 = vld [vmem:[#allocation6 + $0x2e8] sm:$0xff] }
 0x1d9   : > { %2142 = vmatprep.subr.bf16.mxu1 %v4879_v53  ;;  %v5477_v53 = vld [vmem:[#allocation9 + $0x1d4] ss:$8 sps:$4 sm:$0xff]  }
 0x1da   : > { %4079 = vmatpush1.bf16.msra.mxu0 %v5445_v54  ;;  %v2349_v54 = vsub.s32 2, %v6340_v62  ;;  %v593_v40 = vld [vmem:[#allocation6 + $0x568] sm:$0xff] }
 0x1db   : > { %4080 = vmatprep.subr.bf16.mxu0 %v5450_v57  ;;  %v4785_v57 = vcombine.high %v505_v51, %v513_v52  ;;  %v609_v46 = vld [vmem:[#allocation6 + $0x5e8] sm:$0xff] }
 0x1dc   : > { %2143 = vmatpush1.bf16.msra.mxu1 %v4878_v58  ;;  %v5475_v58 = vld [vmem:[#allocation9 + $0x1d0] ss:$8 sps:$4 sm:$0xff]   ;;  %v2350_v61 = vrot.slane %v6345_v5, %v2349_v54 }
 0x1dd   : > { %2144 = vmatprep.subr.bf16.mxu1 %v4895_v59  ;;  %v521_v59 = vld [vmem:[#allocation6 + $0x328] sm:$0xff] }
 0x1de   : > { %4081 = vmatpush1.bf16.msra.mxu0 %v5448_v60  ;;  %v529_v60 = vld [vmem:[#allocation6 + $0x368] sm:$0xff] }
 0x1df   : > { %4082 = vmatprep.subr.bf16.mxu0 %v5453_v0  ;;  %v2354_v0 = vrot.slane %v6345_v5, %v2353_v56 }
 0x1e0   : > { %2145 = vmatpush1.bf16.msra.mxu1 %v4894_v1  ;;  %v4784_v1 = vcombine.low %v505_v51, %v513_v52  ;;  %v617_v51 = vld [vmem:[#allocation6 + $0x628] sm:$0xff] }
 0x1e1   : > { %2146 = vmatprep.subr.bf16.mxu1 %v4911_v2  ;;  %v4801_v2 = vcombine.high %v521_v59, %v529_v60  ;;  %v625_v52 = vld [vmem:[#allocation6 + $0x668] sm:$0xff] }
 0x1e2   : > { %4083 = vmatpush1.bf16.msra.mxu0 %v5451_v4 }
 0x1e3   : > { %4084 = vmatprep.subr.bf16.mxu0 %v5456_v10  ;;  %v545_v10 = vld [vmem:[#allocation6 + $0x3e8] sm:$0xff] }
 0x1e4   : > { %2147 = vmatpush1.bf16.msra.mxu1 %v4910_v11  ;;  %v4816_v28 = vcombine.low %v537_v9, %v545_v10 }
 0x1e5   : > { %2148 = vmatprep.subr.bf16.mxu1 %v4927_v12 }
 0x1e6   : > { %4085 = vmatpush1.bf16.msra.mxu0 %v5454_v13  ;;  %v5483_v13 = vld [vmem:[#allocation9 + $0x1f4] ss:$8 sps:$4 sm:$0xff]  }
 0x1e7   : > { %4086 = vmatprep.subr.bf16.mxu0 %v5459_v16  ;;  %v4800_v16 = vcombine.low %v521_v59, %v529_v60  ;;  %v633_v59 = vld [vmem:[#allocation6 + $0x6a8] sm:$0xff] }
 0x1e8   : > { %2149 = vmatpush1.bf16.msra.mxu1 %v4926_v17  ;;  %v641_v60 = vld [vmem:[#allocation6 + $0x6e8] sm:$0xff] }
 0x1e9   : > { %2150 = vmatprep.subr.bf16.mxu1 %v4943_v19 }
 0x1ea   : > { %4087 = vmatpush1.bf16.msra.mxu0 %v5457_v20  ;;  %v4817_v20 = vcombine.high %v537_v9, %v545_v10  ;;  %v4912_v9 = vcombine.low %v633_v59, %v641_v60 }
 0x1eb   : > { %4088 = vmatprep.subr.bf16.mxu0 %v5462_v23  ;;  %v553_v23 = vld [vmem:[#allocation6 + $0x428] sm:$0xff] }
 0x1ec   : > { %2151 = vmatpush1.bf16.msra.mxu1 %v4942_v24  ;;  %v561_v24 = vld [vmem:[#allocation6 + $0x468] sm:$0xff] }
 0x1ed   : > { %2161 = vmatprep.subr.bf16.mxu1 %v4705_v25 }
 0x1ee   : > { %4089 = vmatpush1.bf16.msra.mxu0 %v5460_v26  ;;  %v5486_v26 = vld [vmem:[#allocation9 + $0x204] ss:$8 sps:$4 sm:$0xff]  }
 0x1ef   : > { %2153 = vmatmul.mubr.bf16.vlgmr.msra.gmra.mrb[16].mxu1 %v6330_v8  ;;  %4090 = vmatprep.subr.bf16.mxu0 %v5465_v29  ;;  %v4833_v29 = vcombine.high %v553_v23, %v561_v24 }
 0x1f0   : > { %2162 = vmatpush1.bf16.msra.mxu1 %v4704_v30  ;;  %2193 = vmatprep.mubr.bf16.mxu1 %v6326_v18 }
 0x1f1   : > { %2163 = vmatprep.subr.bf16.mxu1 %v4721_v31  ;;  %v5484_v31 = vld [vmem:[#allocation9 + $0x200] ss:$8 sps:$4 sm:$0xff]  }
 0x1f2   : > { %4091 = vmatpush1.bf16.msra.mxu0 %v5463_v32  ;;  %v569_v32 = vld [vmem:[#allocation6 + $0x4a8] sm:$0xff] }
 0x1f3   : > { %4092 = vmatprep.subr.bf16.mxu0 %v5468_v35  ;;  %v5489_v35 = vld [vmem:[#allocation9 + $0x214] ss:$8 sps:$4 sm:$0xff]  }
 0x1f4   : > { %2164 = vmatpush1.bf16.msra.mxu1 %v4720_v36  ;;  %v4832_v36 = vcombine.low %v553_v23, %v561_v24  ;;  %v5508_v24 = vld [vmem:[#allocation9 + $0x280] ss:$8 sps:$4 sm:$0xff]  }
 0x1f5   : > { %2165 = vmatprep.subr.bf16.mxu1 %v4737_v37  ;;  %v4849_v37 = vcombine.high %v569_v32, %v577_v33 }
 0x1f6   : > { %4093 = vmatpush1.bf16.msra.mxu0 %v5466_v38  ;;  %v5487_v38 = vld [vmem:[#allocation9 + $0x210] ss:$8 sps:$4 sm:$0xff]  }
 0x1f7   : > { %4094 = vmatprep.subr.bf16.mxu0 %v5471_v41  ;;  %v5492_v41 = vld [vmem:[#allocation9 + $0x224] ss:$8 sps:$4 sm:$0xff]  }
 0x1f8   : > { %2166 = vmatpush1.bf16.msra.mxu1 %v4736_v42  ;;  %v4848_v42 = vcombine.low %v569_v32, %v577_v33  ;;  %v466_v32 = vld [vmem:[#allocation6 + $0x170] sm:$0xff] }
 0x1f9   : > { %2167 = vmatprep.subr.bf16.mxu1 %v4753_v43  ;;  %v4865_v43 = vcombine.high %v585_v39, %v593_v40  ;;  %v5516_v33 = vld [vmem:[#allocation9 + $0x2a4] ss:$8 sps:$4 sm:$0xff]  }
 0x1fa   : > { %4095 = vmatpush1.bf16.msra.mxu0 %v5469_v44  ;;  %v5490_v44 = vld [vmem:[#allocation9 + $0x220] ss:$8 sps:$4 sm:$0xff]  }
 0x1fb   : > { %4096 = vmatprep.subr.bf16.mxu0 %v5474_v47  ;;  %v5495_v47 = vld [vmem:[#allocation9 + $0x234] ss:$8 sps:$4 sm:$0xff]  }
 0x1fc   : > { %2168 = vmatpush1.bf16.msra.mxu1 %v4752_v48  ;;  %v4864_v48 = vcombine.low %v585_v39, %v593_v40  ;;  %v5519_v39 = vld [vmem:[#allocation9 + $0x2b4] ss:$8 sps:$4 sm:$0xff]  }
 0x1fd   : > { %2169 = vmatprep.subr.bf16.mxu1 %v4769_v49  ;;  %v4881_v49 = vcombine.high %v601_v45, %v609_v46 }
 0x1fe   : > { %4097 = vmatpush1.bf16.msra.mxu0 %v5472_v50  ;;  %v5493_v50 = vld [vmem:[#allocation9 + $0x230] ss:$8 sps:$4 sm:$0xff]  }
 0x1ff   : > { %4098 = vmatprep.subr.bf16.mxu0 %v5477_v53  ;;  %v5498_v53 = vld [vmem:[#allocation9 + $0x244] ss:$8 sps:$4 sm:$0xff]  }
 0x200   : > { %2170 = vmatpush1.bf16.msra.mxu1 %v4768_v55  ;;  %v4880_v55 = vcombine.low %v601_v45, %v609_v46  ;;  %v5522_v45 = vld [vmem:[#allocation9 + $0x2c4] ss:$8 sps:$4 sm:$0xff]  }
 0x201   : > { %2171 = vmatprep.subr.bf16.mxu1 %v4785_v57  ;;  %v4897_v57 = vcombine.high %v617_v51, %v625_v52 }
 0x202   : > { %v2031_v4 = vpop.f32.mrb[4].mxu1  ;;  %4099 = vmatpush1.bf16.msra.mxu0 %v5475_v58  ;;  %v5496_v58 = vld [vmem:[#allocation9 + $0x240] ss:$8 sps:$4 sm:$0xff]  }
 0x203   : > { %v2421_v11 = vadd.f32 %v2350_v61, %v2031_v4  ;;  %v2033_v12 = vpop.f32.mrb[5].mxu1  ;;  %4100 = vmatprep.subr.bf16.mxu0 %v5480_v63  ;;  %v5501_v61 = vld [vmem:[#allocation9 + $0x254] ss:$8 sps:$4 sm:$0xff]   ;;  %v4896_v63 = vcombine.low %v617_v51, %v625_v52  ;;  %v2357_v52 = vsub.s32 4, %v6340_v62 }
 0x204   : > { %v2422_v14 = vadd.f32 %v2354_v0, %v2033_v12  ;;  %v2035_v15 = vpop.f32.mrb[6].mxu1  ;;  %2172 = vmatpush1.bf16.msra.mxu1 %v4784_v1  ;;  %v4913_v0 = vcombine.high %v633_v59, %v641_v60  ;;  %v5499_v1 = vld [vmem:[#allocation9 + $0x250] ss:$8 sps:$4 sm:$0xff]   ;;  %v5525_v51 = vld [vmem:[#allocation9 + $0x2d4] ss:$8 sps:$4 sm:$0xff]   ;;  %v522_v59 = vld [vmem:[#allocation6 + $0x330] sm:$0xff] }
 0x205   : > { %v2437_v17 = vpack.c.bf16 %v2421_v11, %v2421_v11  ;;  %v2036_v19 = vpop.f32.mrb[7].mxu1  ;;  %2173 = vmatprep.subr.bf16.mxu1 %v4801_v2  ;;  %v649_v2 = vld [vmem:[#allocation6 + $0x728] sm:$0xff]  ;;  %v5502_v11 = vld [vmem:[#allocation9 + $0x260] ss:$8 sps:$4 sm:$0xff]  }
 0x206   : > { %v2438_v21 = vpack.c.bf16 %v2422_v14, %v2422_v14  ;;  %4101 = vmatpush1.bf16.msra.mxu0 %v5478_v7  ;;  %v657_v4 = vld [vmem:[#allocation6 + $0x768] sm:$0xff]  ;;  %v5504_v7 = vld [vmem:[#allocation9 + $0x264] ss:$8 sps:$4 sm:$0xff]  }
 0x207   : > { %v2453_v25 = vmul.bf16 1009007652, %v2437_v17  ;;  %4102 = vmatprep.subr.bf16.mxu0 %v5483_v13  ;;  %v4929_v10 = vcombine.high %v649_v2, %v657_v4  ;;  %v665_v12 = vld [vmem:[#allocation6 + $0x7a8] sm:$0xff]  ;;  %v4928_v15 = vcombine.low %v649_v2, %v657_v4  ;;  %v426_v19 = vld [vmem:[#allocation6 + $0x30] sm:$0xff] }
 0x208   : > { %v2454_v27 = vmul.bf16 1009007652, %v2438_v21  ;;  %2174 = vmatpush1.bf16.msra.mxu1 %v4800_v16  ;;  %v673_v13 = vld [vmem:[#allocation6 + $0x7e8] sm:$0xff]  ;;  %v530_v60 = vld [vmem:[#allocation6 + $0x370] sm:$0xff] }
 0x209   : > { %2175 = vmatprep.subr.bf16.mxu1 %v4817_v20  ;;  %v2469_v34 = vmax.bf16 %v2453_v25, %v2437_v17  ;;  %v5507_v14 = vld [vmem:[#allocation9 + $0x274] ss:$8 sps:$4 sm:$0xff]   ;;  %v4945_v16 = vcombine.high %v665_v12, %v673_v13  ;;  %v5505_v17 = vld [vmem:[#allocation9 + $0x270] ss:$8 sps:$4 sm:$0xff]   ;;  %v434_v20 = vld [vmem:[#allocation6 + $0x70] sm:$0xff]  ;;  %v4803_v2 = vcombine.high %v522_v59, %v530_v60 }
 0x20a   : > { %v2470_v30 = vmax.bf16 %v2454_v27, %v2438_v21  ;;  %4103 = vmatpush1.bf16.msra.mxu0 %v5481_v22  ;;  %v5510_v21 = vld [vmem:[#allocation9 + $0x284] ss:$8 sps:$4 sm:$0xff]   ;;  %v4944_v22 = vcombine.low %v665_v12, %v673_v13  ;;  %v4707_v23 = vcombine.high %v426_v19, %v434_v20  ;;  %v5513_v27 = vld [vmem:[#allocation9 + $0x294] ss:$8 sps:$4 sm:$0xff]  }
 0x20b   : > { %4113 = vmatprep.subr.bf16.mxu0 %v5486_v26  ;;  %v442_v25 = vld [vmem:[#allocation6 + $0xb0] sm:$0xff]  ;;  %v5531_v13 = vld [vmem:[#allocation9 + $0x2f4] ss:$8 sps:$4 sm:$0xff]  }
 0x20c   : > { %2176 = vmatpush1.bf16.msra.mxu1 %v4816_v28  ;;  %4104 = vmatprep.mubr.bf16.mxu0 %v2470_v30  ;;  %v450_v26 = vld [vmem:[#allocation6 + $0xf0] sm:$0xff]  ;;  %v4706_v28 = vcombine.low %v426_v19, %v434_v20  ;;  %v5511_v30 = vld [vmem:[#allocation9 + $0x290] ss:$8 sps:$4 sm:$0xff]  }
 0x20d   : > { %4105 = vmatmul.mubr.bf16.vlgmr.msra.gmra.mrb[0].mxu0 %v2469_v34  ;;  %2177 = vmatprep.subr.bf16.mxu1 %v4833_v29  ;;  %v4723_v29 = vcombine.high %v442_v25, %v450_v26  ;;  %v4722_v34 = vcombine.low %v442_v25, %v450_v26  ;;  %v5534_v25 = vld [vmem:[#allocation9 + $0x304] ss:$8 sps:$4 sm:$0xff]  }
 0x20e   : > { %4114 = vmatpush1.bf16.msra.mxu0 %v5484_v31  ;;  %v458_v31 = vld [vmem:[#allocation6 + $0x130] sm:$0xff] }
 0x20f   : > { %4115 = vmatprep.subr.bf16.mxu0 %v5489_v35  ;;  %v4739_v35 = vcombine.high %v458_v31, %v466_v32  ;;  %v4738_v40 = vcombine.low %v458_v31, %v466_v32  ;;  %v570_v31 = vld [vmem:[#allocation6 + $0x4b0] sm:$0xff] }
 0x210   : > { %2178 = vmatpush1.bf16.msra.mxu1 %v4832_v36  ;;  %v5514_v36 = vld [vmem:[#allocation9 + $0x2a0] ss:$8 sps:$4 sm:$0xff]  }
 0x211   : > { %2179 = vmatprep.subr.bf16.mxu1 %v4849_v37  ;;  %v474_v37 = vld [vmem:[#allocation6 + $0x1b0] sm:$0xff] }
 0x212   : > { %4116 = vmatpush1.bf16.msra.mxu0 %v5487_v38  ;;  %v482_v38 = vld [vmem:[#allocation6 + $0x1f0] sm:$0xff] }
 0x213   : > { %4117 = vmatprep.subr.bf16.mxu0 %v5492_v41  ;;  %v4755_v41 = vcombine.high %v474_v37, %v482_v38  ;;  %v4754_v46 = vcombine.low %v474_v37, %v482_v38  ;;  %v578_v32 = vld [vmem:[#allocation6 + $0x4f0] sm:$0xff]  ;;  %v5535_v37 = vld [vmem:[#allocation9 + $0x310] ss:$8 sps:$4 sm:$0xff]  }
 0x214   : > { %2180 = vmatpush1.bf16.msra.mxu1 %v4848_v42  ;;  %v5517_v42 = vld [vmem:[#allocation9 + $0x2b0] ss:$8 sps:$4 sm:$0xff]   ;;  %v586_v38 = vld [vmem:[#allocation6 + $0x530] sm:$0xff] }
 0x215   : > { %2181 = vmatprep.subr.bf16.mxu1 %v4865_v43  ;;  %v490_v43 = vld [vmem:[#allocation6 + $0x230] sm:$0xff] }
 0x216   : > { %4118 = vmatpush1.bf16.msra.mxu0 %v5490_v44  ;;  %v498_v44 = vld [vmem:[#allocation6 + $0x270] sm:$0xff] }
 0x217   : > { %4119 = vmatprep.subr.bf16.mxu0 %v5495_v47  ;;  %v4771_v47 = vcombine.high %v490_v43, %v498_v44 }
 0x218   : > { %2182 = vmatpush1.bf16.msra.mxu1 %v4864_v48  ;;  %v5520_v48 = vld [vmem:[#allocation9 + $0x2c0] ss:$8 sps:$4 sm:$0xff]  }
 0x219   : > { %2183 = vmatprep.subr.bf16.mxu1 %v4881_v49  ;;  %v506_v49 = vld [vmem:[#allocation6 + $0x2b0] sm:$0xff] }
 0x21a   : > { %4120 = vmatpush1.bf16.msra.mxu0 %v5493_v50  ;;  %v514_v50 = vld [vmem:[#allocation6 + $0x2f0] sm:$0xff] }
 0x21b   : > { %4121 = vmatprep.subr.bf16.mxu0 %v5498_v53  ;;  %v4770_v53 = vcombine.low %v490_v43, %v498_v44  ;;  %v5538_v43 = vld [vmem:[#allocation9 + $0x320] ss:$8 sps:$4 sm:$0xff]  }
 0x21c   : > { %2184 = vmatpush1.bf16.msra.mxu1 %v4880_v55  ;;  %v2361_v55 = vsub.s32 5, %v6340_v62  ;;  %v602_v44 = vld [vmem:[#allocation6 + $0x5b0] sm:$0xff] }
 0x21d   : > { %2185 = vmatprep.subr.bf16.mxu1 %v4897_v57  ;;  %v4787_v57 = vcombine.high %v506_v49, %v514_v50 }
 0x21e   : > { %4122 = vmatpush1.bf16.msra.mxu0 %v5496_v58  ;;  %v5523_v58 = vld [vmem:[#allocation9 + $0x2d0] ss:$8 sps:$4 sm:$0xff]  }
 0x21f   : > { %4123 = vmatprep.subr.bf16.mxu0 %v5501_v61  ;;  %v2358_v61 = vrot.slane %v6345_v5, %v2357_v52 }
 0x220   : > { %2186 = vmatpush1.bf16.msra.mxu1 %v4896_v63  ;;  %v5528_v63 = vld [vmem:[#allocation9 + $0x2e4] ss:$8 sps:$4 sm:$0xff]  }
 0x221   : > { %2187 = vmatprep.subr.bf16.mxu1 %v4913_v0  ;;  %v2362_v0 = vrot.slane %v6345_v5, %v2361_v55 }
 0x222   : > { %4124 = vmatpush1.bf16.msra.mxu0 %v5499_v1  ;;  %v4786_v1 = vcombine.low %v506_v49, %v514_v50  ;;  %v5541_v49 = vld [vmem:[#allocation9 + $0x330] ss:$8 sps:$4 sm:$0xff]   ;;  %v618_v50 = vld [vmem:[#allocation6 + $0x630] sm:$0xff] }
 0x223   : > { %4125 = vmatprep.subr.bf16.mxu0 %v5504_v7  ;;  %v5526_v7 = vld [vmem:[#allocation9 + $0x2e0] ss:$8 sps:$4 sm:$0xff]  }
 0x224   : > { %2188 = vmatpush1.bf16.msra.mxu1 %v4912_v9  ;;  %v538_v9 = vld [vmem:[#allocation6 + $0x3b0] sm:$0xff] }
 0x225   : > { %2189 = vmatprep.subr.bf16.mxu1 %v4929_v10  ;;  %v546_v10 = vld [vmem:[#allocation6 + $0x3f0] sm:$0xff] }
 0x226   : > { %4126 = vmatpush1.bf16.msra.mxu0 %v5502_v11  ;;  %v4819_v5 = vcombine.high %v538_v9, %v546_v10 }
 0x227   : > { %4127 = vmatprep.subr.bf16.mxu0 %v5507_v14 }
 0x228   : > { %2190 = vmatpush1.bf16.msra.mxu1 %v4928_v15 }
 0x229   : > { %2191 = vmatprep.subr.bf16.mxu1 %v4945_v16  ;;  %v4802_v16 = vcombine.low %v522_v59, %v530_v60  ;;  %v5544_v59 = vld [vmem:[#allocation9 + $0x340] ss:$8 sps:$4 sm:$0xff]  }
 0x22a   : > { %4128 = vmatpush1.bf16.msra.mxu0 %v5505_v17  ;;  %v634_v60 = vld [vmem:[#allocation6 + $0x6b0] sm:$0xff] }
 0x22b   : > { %4129 = vmatprep.subr.bf16.mxu0 %v5510_v21  ;;  %v5529_v21 = vld [vmem:[#allocation9 + $0x2f0] ss:$8 sps:$4 sm:$0xff]  }
 0x22c   : > { %2192 = vmatpush1.bf16.msra.mxu1 %v4944_v22  ;;  %v554_v22 = vld [vmem:[#allocation6 + $0x430] sm:$0xff] }
 0x22d   : > { %2202 = vmatprep.subr.bf16.mxu1 %v4707_v23  ;;  %v562_v23 = vld [vmem:[#allocation6 + $0x470] sm:$0xff] }
 0x22e   : > { %4130 = vmatpush1.bf16.msra.mxu0 %v5508_v24 }
 0x22f   : > { %2194 = vmatmul.mubr.bf16.vlgmr.msra.gmra.mrb[20].mxu1 %v6330_v8  ;;  %4131 = vmatprep.subr.bf16.mxu0 %v5513_v27  ;;  %v4818_v27 = vcombine.low %v538_v9, %v546_v10  ;;  %v5552_v9 = vld [vmem:[#allocation9 + $0x364] ss:$8 sps:$4 sm:$0xff]  }
 0x230   : > { %2203 = vmatpush1.bf16.msra.mxu1 %v4706_v28  ;;  %2234 = vmatprep.mubr.bf16.mxu1 %v6326_v18  ;;  %v4835_v28 = vcombine.high %v554_v22, %v562_v23 }
 0x231   : > { %2204 = vmatprep.subr.bf16.mxu1 %v4723_v29 }
 0x232   : > { %4132 = vmatpush1.bf16.msra.mxu0 %v5511_v30  ;;  %v5532_v30 = vld [vmem:[#allocation9 + $0x300] ss:$8 sps:$4 sm:$0xff]  }
 0x233   : > { %4133 = vmatprep.subr.bf16.mxu0 %v5516_v33 }
 0x234   : > { %2205 = vmatpush1.bf16.msra.mxu1 %v4722_v34  ;;  %v5537_v34 = vld [vmem:[#allocation9 + $0x314] ss:$8 sps:$4 sm:$0xff]  }
 0x235   : > { %2206 = vmatprep.subr.bf16.mxu1 %v4739_v35  ;;  %v4834_v35 = vcombine.low %v554_v22, %v562_v23 }
 0x236   : > { %4134 = vmatpush1.bf16.msra.mxu0 %v5514_v36  ;;  %v4851_v36 = vcombine.high %v570_v31, %v578_v32 }
 0x237   : > { %4135 = vmatprep.subr.bf16.mxu0 %v5519_v39  ;;  %v594_v39 = vld [vmem:[#allocation6 + $0x570] sm:$0xff] }
 0x238   : > { %2207 = vmatpush1.bf16.msra.mxu1 %v4738_v40  ;;  %v5540_v40 = vld [vmem:[#allocation9 + $0x324] ss:$8 sps:$4 sm:$0xff]  }
 0x239   : > { %2208 = vmatprep.subr.bf16.mxu1 %v4755_v41  ;;  %v4850_v41 = vcombine.low %v570_v31, %v578_v32  ;;  %v459_v31 = vld [vmem:[#allocation6 + $0x138] sm:$0xff] }
 0x23a   : > { %4136 = vmatpush1.bf16.msra.mxu0 %v5517_v42  ;;  %v4867_v42 = vcombine.high %v586_v38, %v594_v39  ;;  %v467_v32 = vld [vmem:[#allocation6 + $0x178] sm:$0xff] }
 0x23b   : > { %4137 = vmatprep.subr.bf16.mxu0 %v5522_v45  ;;  %v610_v45 = vld [vmem:[#allocation6 + $0x5f0] sm:$0xff] }
 0x23c   : > { %2209 = vmatpush1.bf16.msra.mxu1 %v4754_v46  ;;  %v5543_v46 = vld [vmem:[#allocation9 + $0x334] ss:$8 sps:$4 sm:$0xff]  }
 0x23d   : > { %2210 = vmatprep.subr.bf16.mxu1 %v4771_v47  ;;  %v4866_v47 = vcombine.low %v586_v38, %v594_v39  ;;  %v483_v38 = vld [vmem:[#allocation6 + $0x1f8] sm:$0xff]  ;;  %v5567_v39 = vld [vmem:[#allocation9 + $0x3b4] ss:$8 sps:$4 sm:$0xff]  }
 0x23e   : > { %4138 = vmatpush1.bf16.msra.mxu0 %v5520_v48  ;;  %v4883_v48 = vcombine.high %v602_v44, %v610_v45 }
 0x23f   : > { %4139 = vmatprep.subr.bf16.mxu0 %v5525_v51  ;;  %v626_v51 = vld [vmem:[#allocation6 + $0x670] sm:$0xff] }
 0x240   : > { %2211 = vmatpush1.bf16.msra.mxu1 %v4770_v53  ;;  %v5546_v53 = vld [vmem:[#allocation9 + $0x344] ss:$8 sps:$4 sm:$0xff]  }
 0x241   : > { %2212 = vmatprep.subr.bf16.mxu1 %v4787_v57  ;;  %v4882_v57 = vcombine.low %v602_v44, %v610_v45  ;;  %v499_v44 = vld [vmem:[#allocation6 + $0x278] sm:$0xff] }
 0x242   : > { %v2072_v4 = vpop.f32.mrb[8].mxu1  ;;  %4140 = vmatpush1.bf16.msra.mxu0 %v5523_v58  ;;  %v4899_v58 = vcombine.high %v618_v50, %v626_v51  ;;  %v5570_v45 = vld [vmem:[#allocation9 + $0x3c4] ss:$8 sps:$4 sm:$0xff]  }
 0x243   : > { %v2423_v11 = vadd.f32 %v2358_v61, %v2072_v4  ;;  %v2074_v12 = vpop.f32.mrb[9].mxu1  ;;  %4141 = vmatprep.subr.bf16.mxu0 %v5528_v63  ;;  %v642_v61 = vld [vmem:[#allocation6 + $0x6f0] sm:$0xff]  ;;  %v5549_v63 = vld [vmem:[#allocation9 + $0x354] ss:$8 sps:$4 sm:$0xff]  }
 0x244   : > { %v2424_v14 = vadd.f32 %v2362_v0, %v2074_v12  ;;  %v2076_v15 = vpop.f32.mrb[10].mxu1  ;;  %2213 = vmatpush1.bf16.msra.mxu1 %v4786_v1  ;;  %v4898_v0 = vcombine.low %v618_v50, %v626_v51  ;;  %v4915_v1 = vcombine.high %v634_v60, %v642_v61  ;;  %v650_v4 = vld [vmem:[#allocation6 + $0x730] sm:$0xff]  ;;  %v4914_v10 = vcombine.low %v634_v60, %v642_v61  ;;  %v5573_v50 = vld [vmem:[#allocation9 + $0x3d4] ss:$8 sps:$4 sm:$0xff]   ;;  %v523_v60 = vld [vmem:[#allocation6 + $0x338] sm:$0xff] }
 0x245   : > { %v2439_v17 = vpack.c.bf16 %v2423_v11, %v2423_v11  ;;  %v2077_v19 = vpop.f32.mrb[11].mxu1  ;;  %2214 = vmatprep.subr.bf16.mxu1 %v4803_v2  ;;  %v5547_v2 = vld [vmem:[#allocation9 + $0x350] ss:$8 sps:$4 sm:$0xff]   ;;  %v5550_v12 = vld [vmem:[#allocation9 + $0x360] ss:$8 sps:$4 sm:$0xff]   ;;  %v2365_v51 = vsub.s32 6, %v6340_v62 }
 0x246   : > { %v2440_v20 = vpack.c.bf16 %v2424_v14, %v2424_v14  ;;  %4142 = vmatpush1.bf16.msra.mxu0 %v5526_v7  ;;  %v658_v7 = vld [vmem:[#allocation6 + $0x770] sm:$0xff]  ;;  %v5555_v15 = vld [vmem:[#allocation9 + $0x374] ss:$8 sps:$4 sm:$0xff]   ;;  %v5553_v19 = vld [vmem:[#allocation9 + $0x370] ss:$8 sps:$4 sm:$0xff]  }
 0x247   : > { %v2455_v24 = vmul.bf16 1009007652, %v2439_v17  ;;  %4143 = vmatprep.subr.bf16.mxu0 %v5531_v13  ;;  %v4931_v11 = vcombine.high %v650_v4, %v658_v7  ;;  %v666_v13 = vld [vmem:[#allocation6 + $0x7b0] sm:$0xff]  ;;  %v531_v61 = vld [vmem:[#allocation6 + $0x378] sm:$0xff] }
 0x248   : > { %v2456_v26 = vmul.bf16 1009007652, %v2440_v20  ;;  %2215 = vmatpush1.bf16.msra.mxu1 %v4802_v16  ;;  %v674_v14 = vld [vmem:[#allocation6 + $0x7f0] sm:$0xff]  ;;  %v4930_v16 = vcombine.low %v650_v4, %v658_v7  ;;  %v4805_v7 = vcombine.high %v523_v60, %v531_v61 }
 0x249   : > { %2216 = vmatprep.subr.bf16.mxu1 %v4819_v5  ;;  %v2471_v33 = vmax.bf16 %v2455_v24, %v2439_v17  ;;  %v4947_v17 = vcombine.high %v666_v13, %v674_v14  ;;  %v427_v5 = vld [vmem:[#allocation6 + $0x38] sm:$0xff]  ;;  %v4946_v22 = vcombine.low %v666_v13, %v674_v14 }
 0x24a   : > { %v2472_v29 = vmax.bf16 %v2456_v26, %v2440_v20  ;;  %4144 = vmatpush1.bf16.msra.mxu0 %v5529_v21  ;;  %v435_v20 = vld [vmem:[#allocation6 + $0x78] sm:$0xff] }
 0x24b   : > { %4154 = vmatprep.subr.bf16.mxu0 %v5534_v25  ;;  %v5558_v21 = vld [vmem:[#allocation9 + $0x384] ss:$8 sps:$4 sm:$0xff]   ;;  %v4709_v23 = vcombine.high %v427_v5, %v435_v20  ;;  %v5556_v24 = vld [vmem:[#allocation9 + $0x380] ss:$8 sps:$4 sm:$0xff]  }
 0x24c   : > { %2217 = vmatpush1.bf16.msra.mxu1 %v4818_v27  ;;  %4145 = vmatprep.mubr.bf16.mxu0 %v2472_v29  ;;  %v443_v25 = vld [vmem:[#allocation6 + $0xb8] sm:$0xff]  ;;  %v5561_v27 = vld [vmem:[#allocation9 + $0x394] ss:$8 sps:$4 sm:$0xff]  }
 0x24d   : > { %4146 = vmatmul.mubr.bf16.vlgmr.msra.gmra.mrb[0].mxu0 %v2471_v33  ;;  %2218 = vmatprep.subr.bf16.mxu1 %v4835_v28  ;;  %v451_v26 = vld [vmem:[#allocation6 + $0xf8] sm:$0xff]  ;;  %v4708_v28 = vcombine.low %v427_v5, %v435_v20 }
 0x24e   : > { %4155 = vmatpush1.bf16.msra.mxu0 %v5532_v30  ;;  %v4725_v29 = vcombine.high %v443_v25, %v451_v26  ;;  %v5559_v30 = vld [vmem:[#allocation9 + $0x390] ss:$8 sps:$4 sm:$0xff]   ;;  %v5564_v33 = vld [vmem:[#allocation9 + $0x3a4] ss:$8 sps:$4 sm:$0xff]  }
 0x24f   : > { %4156 = vmatprep.subr.bf16.mxu0 %v5537_v34  ;;  %v4724_v34 = vcombine.low %v443_v25, %v451_v26  ;;  %v563_v25 = vld [vmem:[#allocation6 + $0x478] sm:$0xff] }
 0x250   : > { %2219 = vmatpush1.bf16.msra.mxu1 %v4834_v35  ;;  %v4741_v35 = vcombine.high %v459_v31, %v467_v32 }
 0x251   : > { %2220 = vmatprep.subr.bf16.mxu1 %v4851_v36  ;;  %v5562_v36 = vld [vmem:[#allocation9 + $0x3a0] ss:$8 sps:$4 sm:$0xff]  }
 0x252   : > { %4157 = vmatpush1.bf16.msra.mxu0 %v5535_v37  ;;  %v475_v37 = vld [vmem:[#allocation6 + $0x1b8] sm:$0xff] }
 0x253   : > { %4158 = vmatprep.subr.bf16.mxu0 %v5540_v40  ;;  %v4740_v40 = vcombine.low %v459_v31, %v467_v32  ;;  %v5580_v32 = vld [vmem:[#allocation9 + $0x400] ss:$8 sps:$4 sm:$0xff]  }
 0x254   : > { %2221 = vmatpush1.bf16.msra.mxu1 %v4850_v41  ;;  %v4757_v41 = vcombine.high %v475_v37, %v483_v38 }
 0x255   : > { %2222 = vmatprep.subr.bf16.mxu1 %v4867_v42  ;;  %v5565_v42 = vld [vmem:[#allocation9 + $0x3b0] ss:$8 sps:$4 sm:$0xff]  }
 0x256   : > { %4159 = vmatpush1.bf16.msra.mxu0 %v5538_v43  ;;  %v491_v43 = vld [vmem:[#allocation6 + $0x238] sm:$0xff] }
 0x257   : > { %4160 = vmatprep.subr.bf16.mxu0 %v5543_v46  ;;  %v4773_v46 = vcombine.high %v491_v43, %v499_v44 }
 0x258   : > { %2223 = vmatpush1.bf16.msra.mxu1 %v4866_v47  ;;  %v5568_v47 = vld [vmem:[#allocation9 + $0x3c0] ss:$8 sps:$4 sm:$0xff]  }
 0x259   : > { %2224 = vmatprep.subr.bf16.mxu1 %v4883_v48  ;;  %v507_v48 = vld [vmem:[#allocation6 + $0x2b8] sm:$0xff] }
 0x25a   : > { %4161 = vmatpush1.bf16.msra.mxu0 %v5541_v49  ;;  %v515_v49 = vld [vmem:[#allocation6 + $0x2f8] sm:$0xff] }
 0x25b   : > { %4162 = vmatprep.subr.bf16.mxu0 %v5546_v53  ;;  %v4772_v53 = vcombine.low %v491_v43, %v499_v44  ;;  %v4788_v4 = vcombine.low %v507_v48, %v515_v49 }
 0x25c   : > { %2225 = vmatpush1.bf16.msra.mxu1 %v4882_v57  ;;  %v2369_v57 = vsub.s32 7, %v6340_v62 }
 0x25d   : > { %2226 = vmatprep.subr.bf16.mxu1 %v4899_v58  ;;  %v4789_v58 = vcombine.high %v507_v48, %v515_v49 }
 0x25e   : > { %4163 = vmatpush1.bf16.msra.mxu0 %v5544_v59  ;;  %v5571_v59 = vld [vmem:[#allocation9 + $0x3d0] ss:$8 sps:$4 sm:$0xff]  }
 0x25f   : > { %4164 = vmatprep.subr.bf16.mxu0 %v5549_v63  ;;  %v5788_v63 = vld [vmem:[#allocation8] sm:$0xff] }
 0x260   : > { %2227 = vmatpush1.bf16.msra.mxu1 %v4898_v0  ;;  %v2366_v0 = vrot.slane %v5788_v63, %v2365_v51 }
 0x261   : > { %2228 = vmatprep.subr.bf16.mxu1 %v4915_v1  ;;  %v5576_v1 = vld [vmem:[#allocation9 + $0x3e4] ss:$8 sps:$4 sm:$0xff]  }
 0x262   : > { %4165 = vmatpush1.bf16.msra.mxu0 %v5547_v2  ;;  %v2370_v2 = vrot.slane %v5788_v63, %v2369_v57  ;;  %v5592_v63 = vld [vmem:[#allocation9 + $0x440] ss:$8 sps:$4 sm:$0xff]  }
 0x263   : > { %4166 = vmatprep.subr.bf16.mxu0 %v5552_v9 }
 0x264   : > { %2229 = vmatpush1.bf16.msra.mxu1 %v4914_v10  ;;  %v5574_v10 = vld [vmem:[#allocation9 + $0x3e0] ss:$8 sps:$4 sm:$0xff]  }
 0x265   : > { %2230 = vmatprep.subr.bf16.mxu1 %v4931_v11  ;;  %v539_v11 = vld [vmem:[#allocation6 + $0x3b8] sm:$0xff] }
 0x266   : > { %4167 = vmatpush1.bf16.msra.mxu0 %v5550_v12  ;;  %v547_v12 = vld [vmem:[#allocation6 + $0x3f8] sm:$0xff] }
 0x267   : > { %4168 = vmatprep.subr.bf16.mxu0 %v5555_v15  ;;  %v5579_v15 = vld [vmem:[#allocation9 + $0x3f4] ss:$8 sps:$4 sm:$0xff]  }
 0x268   : > { %2231 = vmatpush1.bf16.msra.mxu1 %v4930_v16 }
 0x269   : > { %2232 = vmatprep.subr.bf16.mxu1 %v4947_v17 }
 0x26a   : > { %4169 = vmatpush1.bf16.msra.mxu0 %v5553_v19  ;;  %v4804_v19 = vcombine.low %v523_v60, %v531_v61 }
 0x26b   : > { %4170 = vmatprep.subr.bf16.mxu0 %v5558_v21  ;;  %v4821_v21 = vcombine.high %v539_v11, %v547_v12 }
 0x26c   : > { %2233 = vmatpush1.bf16.msra.mxu1 %v4946_v22 }
 0x26d   : > { %2243 = vmatprep.subr.bf16.mxu1 %v4709_v23  ;;  %v5577_v23 = vld [vmem:[#allocation9 + $0x3f0] ss:$8 sps:$4 sm:$0xff]  }
 0x26e   : > { %4171 = vmatpush1.bf16.msra.mxu0 %v5556_v24  ;;  %v555_v24 = vld [vmem:[#allocation6 + $0x438] sm:$0xff] }
 0x26f   : > { %2235 = vmatmul.mubr.bf16.vlgmr.msra.gmra.mrb[24].mxu1 %v6330_v8  ;;  %4172 = vmatprep.subr.bf16.mxu0 %v5561_v27  ;;  %v5582_v27 = vld [vmem:[#allocation9 + $0x404] ss:$8 sps:$4 sm:$0xff]  }
 0x270   : > { %2244 = vmatpush1.bf16.msra.mxu1 %v4708_v28  ;;  %2275 = vmatprep.mubr.bf16.mxu1 %v6326_v18  ;;  %v4756_v18 = vcombine.low %v475_v37, %v483_v38  ;;  %v4836_v37 = vcombine.low %v555_v24, %v563_v25 }
 0x271   : > { %2245 = vmatprep.subr.bf16.mxu1 %v4725_v29  ;;  %v4820_v29 = vcombine.low %v539_v11, %v547_v12  ;;  %v659_v11 = vld [vmem:[#allocation6 + $0x778] sm:$0xff] }
 0x272   : > { %4173 = vmatpush1.bf16.msra.mxu0 %v5559_v30  ;;  %v4837_v30 = vcombine.high %v555_v24, %v563_v25  ;;  %v5600_v12 = vld [vmem:[#allocation9 + $0x464] ss:$8 sps:$4 sm:$0xff]   ;;  %v5604_v24 = vld [vmem:[#allocation9 + $0x480] ss:$8 sps:$4 sm:$0xff]   ;;  %v5609_v25 = vld [vmem:[#allocation9 + $0x494] ss:$8 sps:$4 sm:$0xff]  }
 0x273   : > { %4174 = vmatprep.subr.bf16.mxu0 %v5564_v33  ;;  %v571_v33 = vld [vmem:[#allocation6 + $0x4b8] sm:$0xff] }
 0x274   : > { %2246 = vmatpush1.bf16.msra.mxu1 %v4724_v34  ;;  %v579_v34 = vld [vmem:[#allocation6 + $0x4f8] sm:$0xff] }
 0x275   : > { %2247 = vmatprep.subr.bf16.mxu1 %v4741_v35  ;;  %v4853_v38 = vcombine.high %v571_v33, %v579_v34  ;;  %v4852_v43 = vcombine.low %v571_v33, %v579_v34  ;;  %v5621_v33 = vld [vmem:[#allocation9 + $0x4d4] ss:$8 sps:$4 sm:$0xff]  }
 0x276   : > { %4175 = vmatpush1.bf16.msra.mxu0 %v5562_v36  ;;  %v5585_v36 = vld [vmem:[#allocation9 + $0x414] ss:$8 sps:$4 sm:$0xff]  }
 0x277   : > { %4176 = vmatprep.subr.bf16.mxu0 %v5567_v39  ;;  %v5583_v39 = vld [vmem:[#allocation9 + $0x410] ss:$8 sps:$4 sm:$0xff]  }
 0x278   : > { %2248 = vmatpush1.bf16.msra.mxu1 %v4740_v40  ;;  %v587_v40 = vld [vmem:[#allocation6 + $0x538] sm:$0xff]  ;;  %v6383_v34 = vld [vmem:[#allocation8 + $0x8] sm:$0xff] }
 0x279   : > { %2249 = vmatprep.subr.bf16.mxu1 %v4757_v41  ;;  %v595_v41 = vld [vmem:[#allocation6 + $0x578] sm:$0xff] }
 0x27a   : > { %4177 = vmatpush1.bf16.msra.mxu0 %v5565_v42  ;;  %v5588_v42 = vld [vmem:[#allocation9 + $0x424] ss:$8 sps:$4 sm:$0xff]   ;;  %v4869_v44 = vcombine.high %v587_v40, %v595_v41  ;;  %v4868_v48 = vcombine.low %v587_v40, %v595_v41 }
 0x27b   : > { %4178 = vmatprep.subr.bf16.mxu0 %v5570_v45  ;;  %v5586_v45 = vld [vmem:[#allocation9 + $0x420] ss:$8 sps:$4 sm:$0xff]  }
 0x27c   : > { %2250 = vmatpush1.bf16.msra.mxu1 %v4756_v18  ;;  %v603_v18 = vld [vmem:[#allocation6 + $0x5b8] sm:$0xff] }
 0x27d   : > { %2251 = vmatprep.subr.bf16.mxu1 %v4773_v46  ;;  %v611_v46 = vld [vmem:[#allocation6 + $0x5f8] sm:$0xff] }
 0x27e   : > { %4179 = vmatpush1.bf16.msra.mxu0 %v5568_v47  ;;  %v5591_v47 = vld [vmem:[#allocation9 + $0x434] ss:$8 sps:$4 sm:$0xff]   ;;  %v4885_v49 = vcombine.high %v603_v18, %v611_v46  ;;  %v4884_v60 = vcombine.low %v603_v18, %v611_v46 }
 0x27f   : > { %4180 = vmatprep.subr.bf16.mxu0 %v5573_v50  ;;  %v5589_v50 = vld [vmem:[#allocation9 + $0x430] ss:$8 sps:$4 sm:$0xff]  }
 0x280   : > { %2252 = vmatpush1.bf16.msra.mxu1 %v4772_v53  ;;  %v619_v53 = vld [vmem:[#allocation6 + $0x638] sm:$0xff] }
 0x281   : > { %2253 = vmatprep.subr.bf16.mxu1 %v4789_v58  ;;  %v627_v58 = vld [vmem:[#allocation6 + $0x678] sm:$0xff] }
 0x282   : > { %v2113_v9 = vpop.f32.mrb[12].mxu1  ;;  %4181 = vmatpush1.bf16.msra.mxu0 %v5571_v59  ;;  %v5594_v59 = vld [vmem:[#allocation9 + $0x444] ss:$8 sps:$4 sm:$0xff]   ;;  %v4901_v61 = vcombine.high %v619_v53, %v627_v58 }
 0x283   : > { %v2425_v13 = vadd.f32 %v2366_v0, %v2113_v9  ;;  %v2115_v14 = vpop.f32.mrb[13].mxu1  ;;  %4182 = vmatprep.subr.bf16.mxu0 %v5576_v1  ;;  %v635_v0 = vld [vmem:[#allocation6 + $0x6b8] sm:$0xff]  ;;  %v5595_v9 = vld [vmem:[#allocation9 + $0x450] ss:$8 sps:$4 sm:$0xff]  }
 0x284   : > { %v2426_v16 = vadd.f32 %v2370_v2, %v2115_v14  ;;  %v2117_v17 = vpop.f32.mrb[14].mxu1  ;;  %2254 = vmatpush1.bf16.msra.mxu1 %v4788_v4  ;;  %v643_v1 = vld [vmem:[#allocation6 + $0x6f8] sm:$0xff]  ;;  %v5597_v2 = vld [vmem:[#allocation9 + $0x454] ss:$8 sps:$4 sm:$0xff]   ;;  %v4900_v4 = vcombine.low %v619_v53, %v627_v58 }
 0x285   : > { %v2441_v5 = vpack.c.bf16 %v2425_v13, %v2425_v13  ;;  %v2118_v20 = vpop.f32.mrb[15].mxu1  ;;  %2255 = vmatprep.subr.bf16.mxu1 %v4805_v7  ;;  %v4917_v7 = vcombine.high %v635_v0, %v643_v1  ;;  %v4916_v13 = vcombine.low %v635_v0, %v643_v1  ;;  %v675_v17 = vld [vmem:[#allocation6 + $0x7f8] sm:$0xff]  ;;  %v5639_v1 = vld [vmem:[#allocation9 + $0x534] ss:$8 sps:$4 sm:$0xff]  }
 0x286   : > { %v2442_v22 = vpack.c.bf16 %v2426_v16, %v2426_v16  ;;  %4183 = vmatpush1.bf16.msra.mxu0 %v5574_v10  ;;  %v651_v10 = vld [vmem:[#allocation6 + $0x738] sm:$0xff] }
 0x287   : > { %v2457_v26 = vmul.bf16 1009007652, %v2441_v5  ;;  %4184 = vmatprep.subr.bf16.mxu0 %v5579_v15  ;;  %v4933_v14 = vcombine.high %v651_v10, %v659_v11  ;;  %v5598_v15 = vld [vmem:[#allocation9 + $0x460] ss:$8 sps:$4 sm:$0xff]  }
 0x288   : > { %v2458_v28 = vmul.bf16 1009007652, %v2442_v22  ;;  %2256 = vmatpush1.bf16.msra.mxu1 %v4804_v19  ;;  %v667_v16 = vld [vmem:[#allocation6 + $0x7b8] sm:$0xff]  ;;  %v5603_v19 = vld [vmem:[#allocation9 + $0x474] ss:$8 sps:$4 sm:$0xff]  }
 0x289   : > { %2257 = vmatprep.subr.bf16.mxu1 %v4821_v21  ;;  %v2473_v35 = vmax.bf16 %v2457_v26, %v2441_v5  ;;  %v4932_v5 = vcombine.low %v651_v10, %v659_v11  ;;  %v4949_v20 = vcombine.high %v667_v16, %v675_v17  ;;  %v5601_v21 = vld [vmem:[#allocation9 + $0x470] ss:$8 sps:$4 sm:$0xff]   ;;  %v5628_v58 = vld [vmem:[#allocation9 + $0x500] ss:$8 sps:$4 sm:$0xff]   ;;  %v5648_v11 = vld [vmem:[#allocation9 + $0x564] ss:$8 sps:$4 sm:$0xff]  }
 0x28a   : > { %v2474_v31 = vmax.bf16 %v2458_v28, %v2442_v22  ;;  %4185 = vmatpush1.bf16.msra.mxu0 %v5577_v23  ;;  %v5606_v22 = vld [vmem:[#allocation9 + $0x484] ss:$8 sps:$4 sm:$0xff]   ;;  %v4948_v23 = vcombine.low %v667_v16, %v675_v17  ;;  %v5607_v26 = vld [vmem:[#allocation9 + $0x490] ss:$8 sps:$4 sm:$0xff]   ;;  %v5610_v28 = vld [vmem:[#allocation9 + $0x4a0] ss:$8 sps:$4 sm:$0xff]  }
 0x28b   : > { %4195 = vmatprep.subr.bf16.mxu0 %v5582_v27  ;;  %v5612_v27 = vld [vmem:[#allocation9 + $0x4a4] ss:$8 sps:$4 sm:$0xff]   ;;  %v5634_v0 = vld [vmem:[#allocation9 + $0x520] ss:$8 sps:$4 sm:$0xff]   ;;  %v5643_v10 = vld [vmem:[#allocation9 + $0x550] ss:$8 sps:$4 sm:$0xff]  }
 0x28c   : > { %2258 = vmatpush1.bf16.msra.mxu1 %v4820_v29  ;;  %4186 = vmatprep.mubr.bf16.mxu0 %v2474_v31  ;;  %v5615_v29 = vld [vmem:[#allocation9 + $0x4b4] ss:$8 sps:$4 sm:$0xff]   ;;  %v5618_v31 = vld [vmem:[#allocation9 + $0x4c4] ss:$8 sps:$4 sm:$0xff]   ;;  %v5652_v16 = vld [vmem:[#allocation9 + $0x580] ss:$8 sps:$4 sm:$0xff]  }
 0x28d   : > { %4187 = vmatmul.mubr.bf16.vlgmr.msra.gmra.mrb[0].mxu0 %v2473_v35  ;;  %2259 = vmatprep.subr.bf16.mxu1 %v4837_v30  ;;  %v5613_v30 = vld [vmem:[#allocation9 + $0x4b0] ss:$8 sps:$4 sm:$0xff]   ;;  %v5657_v17 = vld [vmem:[#allocation9 + $0x594] ss:$8 sps:$4 sm:$0xff]  }
 0x28e   : > { %4196 = vmatpush1.bf16.msra.mxu0 %v5580_v32  ;;  %v5616_v32 = vld [vmem:[#allocation9 + $0x4c0] ss:$8 sps:$4 sm:$0xff]   ;;  %v5619_v35 = vld [vmem:[#allocation9 + $0x4d0] ss:$8 sps:$4 sm:$0xff]  }
 0x28f   : > { %4197 = vmatprep.subr.bf16.mxu0 %v5585_v36  ;;  %v5624_v36 = vld [vmem:[#allocation9 + $0x4e4] ss:$8 sps:$4 sm:$0xff]  }
 0x290   : > { %2260 = vmatpush1.bf16.msra.mxu1 %v4836_v37  ;;  %v2378_v37 = vrot.slane %v6383_v34, %v6348_v6 }
 0x291   : > { %2261 = vmatprep.subr.bf16.mxu1 %v4853_v38 }
 0x292   : > { %4198 = vmatpush1.bf16.msra.mxu0 %v5583_v39  ;;  %v5622_v39 = vld [vmem:[#allocation9 + $0x4e0] ss:$8 sps:$4 sm:$0xff]  }
 0x293   : > { %4199 = vmatprep.subr.bf16.mxu0 %v5588_v42  ;;  %v5627_v42 = vld [vmem:[#allocation9 + $0x4f4] ss:$8 sps:$4 sm:$0xff]  }
 0x294   : > { %2262 = vmatpush1.bf16.msra.mxu1 %v4852_v43 }
 0x295   : > { %2263 = vmatprep.subr.bf16.mxu1 %v4869_v44 }
 0x296   : > { %4200 = vmatpush1.bf16.msra.mxu0 %v5586_v45 }
 0x297   : > { %4201 = vmatprep.subr.bf16.mxu0 %v5591_v47  ;;  %v5625_v47 = vld [vmem:[#allocation9 + $0x4f0] ss:$8 sps:$4 sm:$0xff]  }
 0x298   : > { %2264 = vmatpush1.bf16.msra.mxu1 %v4868_v48 }
 0x299   : > { %2265 = vmatprep.subr.bf16.mxu1 %v4885_v49  ;;  %v5630_v49 = vld [vmem:[#allocation9 + $0x504] ss:$8 sps:$4 sm:$0xff]  }
 0x29a   : > { %4202 = vmatpush1.bf16.msra.mxu0 %v5589_v50 }
 0x29b   : > { %4203 = vmatprep.subr.bf16.mxu0 %v5594_v59 }
 0x29c   : > { %2266 = vmatpush1.bf16.msra.mxu1 %v4884_v60  ;;  %v5633_v60 = vld [vmem:[#allocation9 + $0x514] ss:$8 sps:$4 sm:$0xff]  }
 0x29d   : > { %2267 = vmatprep.subr.bf16.mxu1 %v4901_v61  ;;  %v5631_v61 = vld [vmem:[#allocation9 + $0x510] ss:$8 sps:$4 sm:$0xff]  }
 0x29e   : > { %4204 = vmatpush1.bf16.msra.mxu0 %v5592_v63  ;;  %v5636_v63 = vld [vmem:[#allocation9 + $0x524] ss:$8 sps:$4 sm:$0xff]  }
 0x29f   : > { %4205 = vmatprep.subr.bf16.mxu0 %v5597_v2  ;;  %v5637_v2 = vld [vmem:[#allocation9 + $0x530] ss:$8 sps:$4 sm:$0xff]  }
 0x2a0   : > { %2268 = vmatpush1.bf16.msra.mxu1 %v4900_v4  ;;  %v5642_v4 = vld [vmem:[#allocation9 + $0x544] ss:$8 sps:$4 sm:$0xff]  }
 0x2a1   : > { %2269 = vmatprep.subr.bf16.mxu1 %v4917_v7  ;;  %v5640_v7 = vld [vmem:[#allocation9 + $0x540] ss:$8 sps:$4 sm:$0xff]  }
 0x2a2   : > { %4206 = vmatpush1.bf16.msra.mxu0 %v5595_v9  ;;  %v5645_v9 = vld [vmem:[#allocation9 + $0x554] ss:$8 sps:$4 sm:$0xff]  }
 0x2a3   : > { %4207 = vmatprep.subr.bf16.mxu0 %v5600_v12  ;;  %v5646_v12 = vld [vmem:[#allocation9 + $0x560] ss:$8 sps:$4 sm:$0xff]  }
 0x2a4   : > { %2270 = vmatpush1.bf16.msra.mxu1 %v4916_v13  ;;  %v5651_v13 = vld [vmem:[#allocation9 + $0x574] ss:$8 sps:$4 sm:$0xff]  }
 0x2a5   : > { %2271 = vmatprep.subr.bf16.mxu1 %v4933_v14  ;;  %v5649_v14 = vld [vmem:[#allocation9 + $0x570] ss:$8 sps:$4 sm:$0xff]  }
 0x2a6   : > { %4208 = vmatpush1.bf16.msra.mxu0 %v5598_v15  ;;  %v5654_v15 = vld [vmem:[#allocation9 + $0x584] ss:$8 sps:$4 sm:$0xff]  }
 0x2a7   : > { %4209 = vmatprep.subr.bf16.mxu0 %v5603_v19  ;;  %v5655_v19 = vld [vmem:[#allocation9 + $0x590] ss:$8 sps:$4 sm:$0xff]  }
 0x2a8   : > { %2272 = vmatpush1.bf16.msra.mxu1 %v4932_v5  ;;  %v5660_v5 = vld [vmem:[#allocation9 + $0x5a4] ss:$8 sps:$4 sm:$0xff]  }
 0x2a9   : > { %2273 = vmatprep.subr.bf16.mxu1 %v4949_v20  ;;  %v5658_v20 = vld [vmem:[#allocation9 + $0x5a0] ss:$8 sps:$4 sm:$0xff]  }
 0x2aa   : > { %4210 = vmatpush1.bf16.msra.mxu0 %v5601_v21  ;;  %v5663_v21 = vld [vmem:[#allocation9 + $0x5b4] ss:$8 sps:$4 sm:$0xff]  }
 0x2ab   : > { %4211 = vmatprep.subr.bf16.mxu0 %v5606_v22  ;;  %v5661_v22 = vld [vmem:[#allocation9 + $0x5b0] ss:$8 sps:$4 sm:$0xff]  }
 0x2ac   : > { %2274 = vmatpush1.bf16.msra.mxu1 %v4948_v23  ;;  %v5666_v23 = vld [vmem:[#allocation9 + $0x5c4] ss:$8 sps:$4 sm:$0xff]  }
 0x2ae   : > { %4212 = vmatpush1.bf16.msra.mxu0 %v5604_v24  ;;  %v5664_v24 = vld [vmem:[#allocation9 + $0x5c0] ss:$8 sps:$4 sm:$0xff]  }
 0x2af   : > { %2276 = vmatmul.mubr.bf16.vlgmr.msra.gmra.mrb[28].mxu1 %v6330_v8  ;;  %4213 = vmatprep.subr.bf16.mxu0 %v5609_v25  ;;  %v2374_v8 = vrot.slane %v6383_v34, %v6343_v3  ;;  %v5669_v25 = vld [vmem:[#allocation9 + $0x5d4] ss:$8 sps:$4 sm:$0xff]  }
 0x2b2   : > { %4214 = vmatpush1.bf16.msra.mxu0 %v5607_v26  ;;  %v5667_v26 = vld [vmem:[#allocation9 + $0x5d0] ss:$8 sps:$4 sm:$0xff]  }
 0x2b3   : > { %4215 = vmatprep.subr.bf16.mxu0 %v5612_v27  ;;  %v2382_v27 = vrot.slane %v6383_v34, %v2349_v54 }
 0x2b6   : > { %4216 = vmatpush1.bf16.msra.mxu0 %v5610_v28  ;;  %v5672_v28 = vld [vmem:[#allocation9 + $0x5e4] ss:$8 sps:$4 sm:$0xff]  }
 0x2b7   : > { %4217 = vmatprep.subr.bf16.mxu0 %v5615_v29  ;;  %v2386_v29 = vrot.slane %v6383_v34, %v2353_v56  ;;  %v5676_v56 = vld [vmem:[#allocation9 + $0x600] ss:$8 sps:$4 sm:$0xff]  }
 0x2ba   : > { %4218 = vmatpush1.bf16.msra.mxu0 %v5613_v30 }
 0x2bb   : > { %4219 = vmatprep.subr.bf16.mxu0 %v5618_v31  ;;  %v5670_v31 = vld [vmem:[#allocation9 + $0x5e0] ss:$8 sps:$4 sm:$0xff]  }
 0x2be   : > { %4220 = vmatpush1.bf16.msra.mxu0 %v5616_v32 }
 0x2bf   : > { %4221 = vmatprep.subr.bf16.mxu0 %v5621_v33 }
 0x2c2   : > { %v2154_v38 = vpop.f32.mrb[16].mxu1  ;;  %4222 = vmatpush1.bf16.msra.mxu0 %v5619_v35  ;;  %v5675_v35 = vld [vmem:[#allocation9 + $0x5f4] ss:$8 sps:$4 sm:$0xff]  }
 0x2c3   : > { %v2427_v40 = vadd.f32 %v2374_v8, %v2154_v38  ;;  %v2156_v41 = vpop.f32.mrb[17].mxu1  ;;  %4223 = vmatprep.subr.bf16.mxu0 %v5624_v36 }
 0x2c4   : > { %v2428_v43 = vadd.f32 %v2378_v37, %v2156_v41  ;;  %v2158_v44 = vpop.f32.mrb[18].mxu1  ;;  %v5678_v41 = vld [vmem:[#allocation9 + $0x604] ss:$8 sps:$4 sm:$0xff]  }
 0x2c5   : > { %v2443_v45 = vpack.c.bf16 %v2427_v40, %v2427_v40  ;;  %v2159_v18 = vpop.f32.mrb[19].mxu1  ;;  %v5673_v40 = vld [vmem:[#allocation9 + $0x5f0] ss:$8 sps:$4 sm:$0xff]  }
 0x2c6   : > { %v2444_v46 = vpack.c.bf16 %v2428_v43, %v2428_v43  ;;  %4224 = vmatpush1.bf16.msra.mxu0 %v5622_v39  ;;  %v5772_v18 = vld [vmem:[#allocation11 + $0x40] sm:$0xff]  }
 0x2c7   : > { %v2459_v48 = vmul.bf16 1009007652, %v2443_v45  ;;  %4225 = vmatprep.subr.bf16.mxu0 %v5627_v42  ;;  %5228 = vmatprep.subr.bf16.mxu1 %v5772_v18  ;;  %v5732_v18 = vld [vmem:[#allocation9 + $0x724] ss:$8 sps:$4 sm:$0xff]  }
 0x2c8   : > { %v2460_v50 = vmul.bf16 1009007652, %v2444_v46 }
 0x2c9   : > { %v2475_v59 = vmax.bf16 %v2459_v48, %v2443_v45  ;;  %v5681_v45 = vld [vmem:[#allocation9 + $0x614] ss:$8 sps:$4 sm:$0xff]   ;;  %v5679_v48 = vld [vmem:[#allocation9 + $0x610] ss:$8 sps:$4 sm:$0xff]  }
 0x2ca   : > { %v2476_v53 = vmax.bf16 %v2460_v50, %v2444_v46  ;;  %4226 = vmatpush1.bf16.msra.mxu0 %v5625_v47  ;;  %v5773_v46 = vld [vmem:[#allocation11] sm:$0xff]   ;;  %v5774_v47 = vld [vmem:[#allocation11 + $0x48] sm:$0xff]  }
 0x2cb   : > { %4236 = vmatprep.subr.bf16.mxu0 %v5630_v49  ;;  %v5684_v49 = vld [vmem:[#allocation9 + $0x624] ss:$8 sps:$4 sm:$0xff]   ;;  %5229 = vmatpush3.bf16.msra.mxu1 %v5773_v46  ;;  %v5730_v46 = vld [vmem:[#allocation9 + $0x720] ss:$8 sps:$4 sm:$0xff]  }
 0x2cc   : > { %4227 = vmatprep.mubr.bf16.mxu0 %v2476_v53  ;;  %v5775_v50 = vld [vmem:[#allocation11 + $0x8] sm:$0xff]   ;;  %5230 = vmatprep.subr.bf16.mxu1 %v5774_v47  ;;  %v5776_v53 = vld [vmem:[#allocation11 + $0x50] sm:$0xff]  }
 0x2cd   : > { %4228 = vmatmul.mubr.bf16.vlgmr.msra.gmra.mrb[0].mxu0 %v2475_v59  ;;  %v5687_v59 = vld [vmem:[#allocation9 + $0x634] ss:$8 sps:$4 sm:$0xff]  }
 0x2ce   : > { %4237 = vmatpush1.bf16.msra.mxu0 %v5628_v58  ;;  %v5682_v58 = vld [vmem:[#allocation9 + $0x620] ss:$8 sps:$4 sm:$0xff]   ;;  %v5735_v47 = vld [vmem:[#allocation9 + $0x734] ss:$8 sps:$4 sm:$0xff]  }
 0x2cf   : > { %4238 = vmatprep.subr.bf16.mxu0 %v5633_v60  ;;  %5231 = vmatpush3.bf16.msra.mxu1 %v5775_v50  ;;  %v5777_v60 = vld [vmem:[#allocation11 + $0x10] sm:$0xff]   ;;  %v5736_v50 = vld [vmem:[#allocation9 + $0x740] ss:$8 sps:$4 sm:$0xff]  }
 0x2d0   : > { %5232 = vmatprep.subr.bf16.mxu1 %v5776_v53  ;;  %v5741_v53 = vld [vmem:[#allocation9 + $0x754] ss:$8 sps:$4 sm:$0xff]  }
 0x2d2   : > { %4239 = vmatpush1.bf16.msra.mxu0 %v5631_v61  ;;  %v5778_v61 = vld [vmem:[#allocation11 + $0x58] sm:$0xff]  }
 0x2d3   : > { %4240 = vmatprep.subr.bf16.mxu0 %v5636_v63  ;;  %v5685_v63 = vld [vmem:[#allocation9 + $0x630] ss:$8 sps:$4 sm:$0xff]   ;;  %5233 = vmatpush3.bf16.msra.mxu1 %v5777_v60  ;;  %v5742_v60 = vld [vmem:[#allocation9 + $0x760] ss:$8 sps:$4 sm:$0xff]  }
 0x2d4   : > { %5234 = vmatprep.subr.bf16.mxu1 %v5778_v61  ;;  %v5747_v61 = vld [vmem:[#allocation9 + $0x774] ss:$8 sps:$4 sm:$0xff]  }
 0x2d6   : > { %4241 = vmatpush1.bf16.msra.mxu0 %v5634_v0  ;;  %v5690_v0 = vld [vmem:[#allocation9 + $0x644] ss:$8 sps:$4 sm:$0xff]  }
 0x2d7   : > { %4242 = vmatprep.subr.bf16.mxu0 %v5639_v1  ;;  %v5779_v1 = vld [vmem:[#allocation11 + $0x18] sm:$0xff]  }
 0x2d8   : > { %5235 = vmatpush3.bf16.msra.mxu1 %v5779_v1  ;;  %v5748_v1 = vld [vmem:[#allocation9 + $0x780] ss:$8 sps:$4 sm:$0xff]  }
 0x2da   : > { %4243 = vmatpush1.bf16.msra.mxu0 %v5637_v2  ;;  %v5780_v2 = vld [vmem:[#allocation11 + $0x60] sm:$0xff]  }
 0x2db   : > { %4244 = vmatprep.subr.bf16.mxu0 %v5642_v4  ;;  %v5688_v4 = vld [vmem:[#allocation9 + $0x640] ss:$8 sps:$4 sm:$0xff]   ;;  %5236 = vmatprep.subr.bf16.mxu1 %v5780_v2  ;;  %v5753_v2 = vld [vmem:[#allocation9 + $0x794] ss:$8 sps:$4 sm:$0xff]  }
 0x2de   : > { %4245 = vmatpush1.bf16.msra.mxu0 %v5640_v7  ;;  %v5693_v7 = vld [vmem:[#allocation9 + $0x654] ss:$8 sps:$4 sm:$0xff]  }
 0x2df   : > { %4246 = vmatprep.subr.bf16.mxu0 %v5645_v9  ;;  %v5781_v9 = vld [vmem:[#allocation11 + $0x20] sm:$0xff]  }
 0x2e0   : > { %5237 = vmatpush3.bf16.msra.mxu1 %v5781_v9  ;;  %v5754_v9 = vld [vmem:[#allocation9 + $0x7a0] ss:$8 sps:$4 sm:$0xff]  }
 0x2e2   : > { %4247 = vmatpush1.bf16.msra.mxu0 %v5643_v10  ;;  %v5782_v10 = vld [vmem:[#allocation11 + $0x68] sm:$0xff]  }
 0x2e3   : > { %4248 = vmatprep.subr.bf16.mxu0 %v5648_v11  ;;  %v5691_v11 = vld [vmem:[#allocation9 + $0x650] ss:$8 sps:$4 sm:$0xff]   ;;  %5238 = vmatprep.subr.bf16.mxu1 %v5782_v10  ;;  %v5759_v10 = vld [vmem:[#allocation9 + $0x7b4] ss:$8 sps:$4 sm:$0xff]  }
 0x2e6   : > { %4249 = vmatpush1.bf16.msra.mxu0 %v5646_v12  ;;  %v5696_v12 = vld [vmem:[#allocation9 + $0x664] ss:$8 sps:$4 sm:$0xff]  }
 0x2e7   : > { %4250 = vmatprep.subr.bf16.mxu0 %v5651_v13  ;;  %v5694_v13 = vld [vmem:[#allocation9 + $0x660] ss:$8 sps:$4 sm:$0xff]  }
 0x2ea   : > { %4251 = vmatpush1.bf16.msra.mxu0 %v5649_v14  ;;  %v5699_v14 = vld [vmem:[#allocation9 + $0x674] ss:$8 sps:$4 sm:$0xff]  }
 0x2eb   : > { %4252 = vmatprep.subr.bf16.mxu0 %v5654_v15  ;;  %v5697_v15 = vld [vmem:[#allocation9 + $0x670] ss:$8 sps:$4 sm:$0xff]  }
 0x2ee   : > { %4253 = vmatpush1.bf16.msra.mxu0 %v5652_v16  ;;  %v5702_v16 = vld [vmem:[#allocation9 + $0x684] ss:$8 sps:$4 sm:$0xff]  }
 0x2ef   : > { %4254 = vmatprep.subr.bf16.mxu0 %v5657_v17  ;;  %v5700_v17 = vld [vmem:[#allocation9 + $0x680] ss:$8 sps:$4 sm:$0xff]  }
 0x2f2   : > { %4255 = vmatpush1.bf16.msra.mxu0 %v5655_v19  ;;  %v5705_v19 = vld [vmem:[#allocation9 + $0x694] ss:$8 sps:$4 sm:$0xff]  }
 0x2f3   : > { %4256 = vmatprep.subr.bf16.mxu0 %v5660_v5  ;;  %v5703_v5 = vld [vmem:[#allocation9 + $0x690] ss:$8 sps:$4 sm:$0xff]  }
 0x2f6   : > { %4257 = vmatpush1.bf16.msra.mxu0 %v5658_v20  ;;  %v5708_v20 = vld [vmem:[#allocation9 + $0x6a4] ss:$8 sps:$4 sm:$0xff]  }
 0x2f7   : > { %4258 = vmatprep.subr.bf16.mxu0 %v5663_v21  ;;  %v5706_v21 = vld [vmem:[#allocation9 + $0x6a0] ss:$8 sps:$4 sm:$0xff]  }
 0x2fa   : > { %4259 = vmatpush1.bf16.msra.mxu0 %v5661_v22  ;;  %v5711_v22 = vld [vmem:[#allocation9 + $0x6b4] ss:$8 sps:$4 sm:$0xff]  }
 0x2fb   : > { %4260 = vmatprep.subr.bf16.mxu0 %v5666_v23  ;;  %v5709_v23 = vld [vmem:[#allocation9 + $0x6b0] ss:$8 sps:$4 sm:$0xff]  }
 0x2fe   : > { %4261 = vmatpush1.bf16.msra.mxu0 %v5664_v24  ;;  %v5714_v24 = vld [vmem:[#allocation9 + $0x6c4] ss:$8 sps:$4 sm:$0xff]  }
 0x2ff   : > { %4262 = vmatprep.subr.bf16.mxu0 %v5669_v25  ;;  %v5712_v25 = vld [vmem:[#allocation9 + $0x6c0] ss:$8 sps:$4 sm:$0xff]  }
 0x302   : > { %v2195_v30 = vpop.f32.mrb[20].mxu1  ;;  %4263 = vmatpush1.bf16.msra.mxu0 %v5667_v26  ;;  %v5717_v26 = vld [vmem:[#allocation9 + $0x6d4] ss:$8 sps:$4 sm:$0xff]  }
 0x303   : > { %v2429_v32 = vadd.f32 %v2382_v27, %v2195_v30  ;;  %v2197_v33 = vpop.f32.mrb[21].mxu1  ;;  %4264 = vmatprep.subr.bf16.mxu0 %v5672_v28  ;;  %v5715_v27 = vld [vmem:[#allocation9 + $0x6d0] ss:$8 sps:$4 sm:$0xff]   ;;  %v2390_v28 = vrot.slane %v6383_v34, %v2357_v52  ;;  %v2394_v30 = vrot.slane %v6383_v34, %v2361_v55  ;;  %v5724_v55 = vld [vmem:[#allocation9 + $0x700] ss:$8 sps:$4 sm:$0xff]  }
 0x304   : > { %v2430_v8 = vadd.f32 %v2386_v29, %v2197_v33  ;;  %v2199_v36 = vpop.f32.mrb[22].mxu1  ;;  %v5720_v29 = vld [vmem:[#allocation9 + $0x6e4] ss:$8 sps:$4 sm:$0xff]  }
 0x305   : > { %v2445_v37 = vpack.c.bf16 %v2429_v32, %v2429_v32  ;;  %v2200_v38 = vpop.f32.mrb[23].mxu1  ;;  %v5718_v32 = vld [vmem:[#allocation9 + $0x6e0] ss:$8 sps:$4 sm:$0xff]  }
 0x306   : > { %v2446_v39 = vpack.c.bf16 %v2430_v8, %v2430_v8  ;;  %4265 = vmatpush1.bf16.msra.mxu0 %v5670_v31  ;;  %v5723_v8 = vld [vmem:[#allocation9 + $0x6f4] ss:$8 sps:$4 sm:$0xff]  }
 0x307   : > { %v2461_v54 = vmul.bf16 1009007652, %v2445_v37  ;;  %4266 = vmatprep.subr.bf16.mxu0 %v5675_v35 }
 0x308   : > { %v2462_v42 = vmul.bf16 1009007652, %v2446_v39 }
 0x309   : > { %v2477_v44 = vmax.bf16 %v2461_v54, %v2445_v37  ;;  %v5721_v54 = vld [vmem:[#allocation9 + $0x6f0] ss:$8 sps:$4 sm:$0xff]  }
 0x30a   : > { %v2478_v43 = vmax.bf16 %v2462_v42, %v2446_v39  ;;  %4267 = vmatpush1.bf16.msra.mxu0 %v5673_v40 }
 0x30b   : > { %4277 = vmatprep.subr.bf16.mxu0 %v5678_v41  ;;  %v5726_v41 = vld [vmem:[#allocation9 + $0x704] ss:$8 sps:$4 sm:$0xff]  }
 0x30c   : > { %4268 = vmatprep.mubr.bf16.mxu0 %v2478_v43 }
 0x30d   : > { %4269 = vmatmul.mubr.bf16.vlgmr.msra.gmra.mrb[0].mxu0 %v2477_v44  ;;  %v5729_v44 = vld [vmem:[#allocation9 + $0x714] ss:$8 sps:$4 sm:$0xff]  }
 0x30e   : > { %4278 = vmatpush1.bf16.msra.mxu0 %v5676_v56 }
 0x30f   : > { %4279 = vmatprep.subr.bf16.mxu0 %v5681_v45  ;;  %v5727_v45 = vld [vmem:[#allocation9 + $0x710] ss:$8 sps:$4 sm:$0xff]  }
 0x312   : > { %4280 = vmatpush1.bf16.msra.mxu0 %v5679_v48  ;;  %v5733_v48 = vld [vmem:[#allocation9 + $0x730] ss:$8 sps:$4 sm:$0xff]  }
 0x313   : > { %4281 = vmatprep.subr.bf16.mxu0 %v5684_v49  ;;  %v5738_v49 = vld [vmem:[#allocation9 + $0x744] ss:$8 sps:$4 sm:$0xff]  }
 0x316   : > { %4282 = vmatpush1.bf16.msra.mxu0 %v5682_v58  ;;  %v5739_v58 = vld [vmem:[#allocation9 + $0x750] ss:$8 sps:$4 sm:$0xff]  }
 0x317   : > { %4283 = vmatprep.subr.bf16.mxu0 %v5687_v59  ;;  %v5744_v59 = vld [vmem:[#allocation9 + $0x764] ss:$8 sps:$4 sm:$0xff]  }
 0x31a   : > { %4284 = vmatpush1.bf16.msra.mxu0 %v5685_v63  ;;  %v5745_v63 = vld [vmem:[#allocation9 + $0x770] ss:$8 sps:$4 sm:$0xff]  }
 0x31b   : > { %4285 = vmatprep.subr.bf16.mxu0 %v5690_v0  ;;  %v5750_v0 = vld [vmem:[#allocation9 + $0x784] ss:$8 sps:$4 sm:$0xff]  }
 0x31e   : > { %4286 = vmatpush1.bf16.msra.mxu0 %v5688_v4  ;;  %v5751_v4 = vld [vmem:[#allocation9 + $0x790] ss:$8 sps:$4 sm:$0xff]  }
 0x31f   : > { %4287 = vmatprep.subr.bf16.mxu0 %v5693_v7  ;;  %v5756_v7 = vld [vmem:[#allocation9 + $0x7a4] ss:$8 sps:$4 sm:$0xff]  }
 0x322   : > { %4288 = vmatpush1.bf16.msra.mxu0 %v5691_v11  ;;  %v5757_v11 = vld [vmem:[#allocation9 + $0x7b0] ss:$8 sps:$4 sm:$0xff]  }
 0x323   : > { %4289 = vmatprep.subr.bf16.mxu0 %v5696_v12  ;;  %v5762_v12 = vld [vmem:[#allocation9 + $0x7c4] ss:$8 sps:$4 sm:$0xff]  }
 0x326   : > { %4290 = vmatpush1.bf16.msra.mxu0 %v5694_v13  ;;  %v5760_v13 = vld [vmem:[#allocation9 + $0x7c0] ss:$8 sps:$4 sm:$0xff]  }
 0x327   : > { %4291 = vmatprep.subr.bf16.mxu0 %v5699_v14  ;;  %v5765_v14 = vld [vmem:[#allocation9 + $0x7d4] ss:$8 sps:$4 sm:$0xff]  }
 0x32a   : > { %4292 = vmatpush1.bf16.msra.mxu0 %v5697_v15  ;;  %v5763_v15 = vld [vmem:[#allocation9 + $0x7d0] ss:$8 sps:$4 sm:$0xff]  }
 0x32b   : > { %4293 = vmatprep.subr.bf16.mxu0 %v5702_v16  ;;  %v2398_v16 = vrot.slane %v6383_v34, %v2365_v51 }
 0x32e   : > { %4294 = vmatpush1.bf16.msra.mxu0 %v5700_v17  ;;  %v5768_v17 = vld [vmem:[#allocation9 + $0x7e4] ss:$8 sps:$4 sm:$0xff]  }
 0x32f   : > { %4295 = vmatprep.subr.bf16.mxu0 %v5705_v19  ;;  %v2402_v19 = vrot.slane %v6383_v34, %v2369_v57  ;;  %v5783_v34 = vld [vmem:[#allocation11 + $0x28] sm:$0xff]  }
 0x330   : > { %5239 = vmatpush3.bf16.msra.mxu1 %v5783_v34 }
 0x332   : > { %4296 = vmatpush1.bf16.msra.mxu0 %v5703_v5 }
 0x333   : > { %4297 = vmatprep.subr.bf16.mxu0 %v5708_v20  ;;  %v5766_v20 = vld [vmem:[#allocation9 + $0x7e0] ss:$8 sps:$4 sm:$0xff]  }
 0x336   : > { %4298 = vmatpush1.bf16.msra.mxu0 %v5706_v21 }
 0x337   : > { %4299 = vmatprep.subr.bf16.mxu0 %v5711_v22 }
 0x33a   : > { %4300 = vmatpush1.bf16.msra.mxu0 %v5709_v23  ;;  %v5771_v23 = vld [vmem:[#allocation9 + $0x7f4] ss:$8 sps:$4 sm:$0xff]  }
 0x33b   : > { %4301 = vmatprep.subr.bf16.mxu0 %v5714_v24 }
 0x33e   : > { %4302 = vmatpush1.bf16.msra.mxu0 %v5712_v25 }
 0x33f   : > { %4303 = vmatprep.subr.bf16.mxu0 %v5717_v26 }
 0x342   : > { %v2236_v31 = vpop.f32.mrb[24].mxu1  ;;  %4304 = vmatpush1.bf16.msra.mxu0 %v5715_v27 }
 0x343   : > { %v2431_v33 = vadd.f32 %v2390_v28, %v2236_v31  ;;  %v2238_v35 = vpop.f32.mrb[25].mxu1  ;;  %4305 = vmatprep.subr.bf16.mxu0 %v5720_v29  ;;  %v5769_v29 = vld [vmem:[#allocation9 + $0x7f0] ss:$8 sps:$4 sm:$0xff]  }
 0x344   : > { %v2432_v36 = vadd.f32 %v2394_v30, %v2238_v35  ;;  %v2240_v37 = vpop.f32.mrb[26].mxu1  ;;  %v5784_v31 = vld [vmem:[#allocation11 + $0x70] sm:$0xff]   ;;  %v5787_v35 = vld [vmem:[#allocation11 + $0x38] sm:$0xff]  }
 0x345   : > { %v2447_v38 = vpack.c.bf16 %v2431_v33, %v2431_v33  ;;  %v2241_v39 = vpop.f32.mrb[27].mxu1  ;;  %5240 = vmatprep.subr.bf16.mxu1 %v5784_v31  ;;  %v5786_v33 = vld [vmem:[#allocation11 + $0x78] sm:$0xff]  }
 0x346   : > { %v2448_v40 = vpack.c.bf16 %v2432_v36, %v2432_v36  ;;  %4306 = vmatpush1.bf16.msra.mxu0 %v5718_v32  ;;  %v5785_v32 = vld [vmem:[#allocation11 + $0x30] sm:$0xff]  }
 0x347   : > { %v2463_v52 = vmul.bf16 1009007652, %v2447_v38  ;;  %4307 = vmatprep.subr.bf16.mxu0 %v5723_v8  ;;  %5241 = vmatpush3.bf16.msra.mxu1 %v5785_v32  ;;  %v2739_v8 = vld [vmem:[%s6473_s4] sm:$0x3] }
 0x348   : > { %v2464_v42 = vmul.bf16 1009007652, %v2448_v40  ;;  %5242 = vmatprep.subr.bf16.mxu1 %v5786_v33  ;;  %v2744_v36 = vrot.slane %v2739_v8, %v6343_v3  ;;  %v2748_v37 = vrot.slane %v2739_v8, %v6348_v6  ;;  %v5206_v6 = vld [vmem:[%s6475_s6] ss:$0 sm:$0xff] }
 0x349   : > { %v2479_v56 = vmax.bf16 %v2463_v52, %v2447_v38 }
 0x34a   : > { %v2480_v43 = vmax.bf16 %v2464_v42, %v2448_v40  ;;  %4308 = vmatpush1.bf16.msra.mxu0 %v5721_v54 }
 0x34b   : > { %4318 = vmatprep.subr.bf16.mxu0 %v5726_v41  ;;  %5243 = vmatpush3.bf16.msra.mxu1 %v5787_v35 }
 0x34c   : > { %4309 = vmatprep.mubr.bf16.mxu0 %v2480_v43 }
 0x34d   : > { %4310 = vmatmul.mubr.bf16.vlgmr.msra.gmra.mrb[0].mxu0 %v2479_v56 }
 0x34e   : > { %4319 = vmatpush1.bf16.msra.mxu0 %v5724_v55 }
 0x34f   : > { %4320 = vmatprep.subr.bf16.mxu0 %v5729_v44 }
 0x352   : > { %4321 = vmatpush1.bf16.msra.mxu0 %v5727_v45 }
 0x353   : > { %4322 = vmatprep.subr.bf16.mxu0 %v5732_v18 }
 0x356   : > { %4323 = vmatpush1.bf16.msra.mxu0 %v5730_v46 }
 0x357   : > { %4324 = vmatprep.subr.bf16.mxu0 %v5735_v47 }
 0x35a   : > { %4325 = vmatpush1.bf16.msra.mxu0 %v5733_v48 }
 0x35b   : > { %4326 = vmatprep.subr.bf16.mxu0 %v5738_v49 }
 0x35e   : > { %4327 = vmatpush1.bf16.msra.mxu0 %v5736_v50 }
 0x35f   : > { %4328 = vmatprep.subr.bf16.mxu0 %v5741_v53 }
 0x362   : > { %4329 = vmatpush1.bf16.msra.mxu0 %v5739_v58 }
 0x363   : > { %4330 = vmatprep.subr.bf16.mxu0 %v5744_v59 }
 0x366   : > { %4331 = vmatpush1.bf16.msra.mxu0 %v5742_v60 }
 0x367   : > { %4332 = vmatprep.subr.bf16.mxu0 %v5747_v61 }
 0x36a   : > { %4333 = vmatpush1.bf16.msra.mxu0 %v5745_v63 }
 0x36b   : > { %4334 = vmatprep.subr.bf16.mxu0 %v5750_v0 }
 0x36e   : > { %4335 = vmatpush1.bf16.msra.mxu0 %v5748_v1 }
 0x36f   : > { %4336 = vmatprep.subr.bf16.mxu0 %v5753_v2 }
 0x372   : > { %4337 = vmatpush1.bf16.msra.mxu0 %v5751_v4 }
 0x373   : > { %4338 = vmatprep.subr.bf16.mxu0 %v5756_v7 }
 0x376   : > { %4339 = vmatpush1.bf16.msra.mxu0 %v5754_v9 }
 0x377   : > { %4340 = vmatprep.subr.bf16.mxu0 %v5759_v10 }
 0x37a   : > { %4341 = vmatpush1.bf16.msra.mxu0 %v5757_v11 }
 0x37b   : > { %4342 = vmatprep.subr.bf16.mxu0 %v5762_v12 }
 0x37e   : > { %4343 = vmatpush1.bf16.msra.mxu0 %v5760_v13 }
 0x37f   : > { %4344 = vmatprep.subr.bf16.mxu0 %v5765_v14 }
 0x382   : > { %v2277_v5 = vpop.f32.mrb[28].mxu1  ;;  %4345 = vmatpush1.bf16.msra.mxu0 %v5763_v15 }
 0x383   : > { %v2433_v21 = vadd.f32 %v2398_v16, %v2277_v5  ;;  %v2279_v22 = vpop.f32.mrb[29].mxu1  ;;  %4346 = vmatprep.subr.bf16.mxu0 %v5768_v17 }
 0x384   : > { %v2434_v24 = vadd.f32 %v2402_v19, %v2279_v22  ;;  %v2281_v25 = vpop.f32.mrb[30].mxu1 }
 0x385   : > { %v2449_v26 = vpack.c.bf16 %v2433_v21, %v2433_v21  ;;  %v2282_v27 = vpop.f32.mrb[31].mxu1 }
 0x386   : > { %v2450_v28 = vpack.c.bf16 %v2434_v24, %v2434_v24  ;;  %4347 = vmatpush1.bf16.msra.mxu0 %v5766_v20 }
 0x387   : > { %v2465_v51 = vmul.bf16 1009007652, %v2449_v26  ;;  %4348 = vmatprep.subr.bf16.mxu0 %v5771_v23 }
 0x388   : > { %v2466_v30 = vmul.bf16 1009007652, %v2450_v28 }
 0x389   : > { %v2481_v57 = vmax.bf16 %v2465_v51, %v2449_v26 }
 0x38a   : > { %v2482_v62 = vmax.bf16 %v2466_v30, %v2450_v28  ;;  %4349 = vmatpush1.bf16.msra.mxu0 %v5769_v29 }
 0x38c   : > { %4350 = vmatprep.mubr.bf16.mxu0 %v2482_v62 }
 0x38d   : > { %4351 = vmatmul.mubr.bf16.vlgmr.msra.gmra.mrb[0].mxu0 %v2481_v57 }
 0x460   : > { %v4352_v38 = vpop.f32.mrb[0].mxu0 }
 0x461   : > { %v5250_v39 = vadd.f32 %v4352_v38, %v2744_v36  ;;  %v4354_v40 = vpop.f32.mrb[1].mxu0 }
 0x462   : > { %v5251_v54 = vadd.f32 %v4354_v40, %v2748_v37  ;;  %v4356_v52 = vpop.f32.mrb[2].mxu0 }
 0x463   : > { %v4359_v41 = vmul.f32 0.01, %v5250_v39  ;;  %v4357_v42 = vpop.f32.mrb[3].mxu0 }
 0x464   : > { %v4360_v43 = vmul.f32 0.01, %v5251_v54 }
 0x465   : > { %v4361_v55 = vmax.f32 %v5250_v39, %v4359_v41 }
 0x466   : > { %v4362_v56 = vmax.f32 %v5251_v54, %v4360_v43 }
 0x467   : > { %v4363_v45 = vpack.c.bf16 %v4361_v55, %v4361_v55 }
 0x468   : > { %v4364_v44 = vpack.c.bf16 %v4362_v56, %v4362_v56 }
 0x46a   : > { %4532 = vmatprep.mubr.bf16.mxu1 %v4364_v44 }
 0x46b   : > { %4533 = vmatmul.mubr.bf16.vlgmr.msra.gmra.mrb[32].mxu1 %v4363_v45 }
 0x53e   : > { %v5244_v3 = vpop.f32.mrb[32].mxu1 }
 0x53f   : > { %v5245_v18 = vpop.f32.mrb[33].mxu1 }
 0x540   : > { %v5246_v46 = vadd.f32 %v5245_v18, %v5244_v3  ;;  %v5247_v47 = vpop.f32.mrb[34].mxu1 }
 0x541   : > { %v5248_v48 = vpop.f32.mrb[35].mxu1 }
 0x542   : > { %v4535_v49 = vadd.f32 %v5246_v46, %v5206_v6 }
 0x544   : > { %4540 = vst [vmem:[%s375_s17] sm:$0xff] %v4535_v49 }
 0x545   : > { %5944 = shalt.err (!%p5941_p8)
}
 0x546   : > { %s5945_s2 = scalar_lea.hbm %s6420_s15, 128  ;;  %s5949_s1 = scalar_lea.hbm %s6476_s7, 256 }
 0x547   : > { %p5946_p12 = scmp.ne.s32.totalorder %s6420_s15, %s5945_s2  ;;  %p5950_p0 = scmp.lt.u32.totalorder %s6420_s15, %s6476_s7 }
 0x548   : > { %p5951_p13 = scmp.lt.u32.totalorder %s5949_s1, %s5945_s2  ;;  %p5953_p6 = scmp.lt.u32.totalorder %s5945_s2, %s6420_s15 }
 0x549   : > { %p5947_p1 = pnand %p5946_p12, %p6501_p5 }
 0x54a   : > { %p5952_p7 = por %p5951_p13, %p5950_p0 }
 0x54b   : > { %p5948_p3 = pneg %p5947_p1 }
 0x54c   : > { %p5954_p10 = por %p5953_p6, %p5952_p7 }
 0x54e   : > { %p5955_p11 = pnand %p5954_p10, %p5948_p3 }
 0x550   : > { %5958 = shalt.err (!%p5955_p11)
}
 0x551   : > { %5298 = dma.vmem_to_hbm [thread:$0]  (%p6501_p5), %s6422_s11, 128, %s6420_s15, %s4542_s14  }
 0x552 PF: > { %s4567_s17 = sand.u32 1, %s6001_s24   ;;  %p6502_p2 = scmp.ne.s32.totalorder %s6497_s23, 0 }
 0x553   : > { %p6503_p4 = scmp.ge.s32.totalorder %s6021_s29, 2  ;;  %s4568_s12 = scalar_lea.sflag [#allocation5], %s4567_s17 }
 0x555   : > { %p5318_p9 = pnand %p6503_p4, %p6502_p2 }
 0x557   : > { %5996 = dma.done.wait (!%p5318_p9), %s4568_s12, 128  }
 0x558   : > { %5998 = vsyncadd (!%p5318_p9), %s4568_s12, 4294967168  ;;  %s25_s29 = sadd.s32 1, %s6021_s29   ;;  %s6504_s24 = smov %s6005_s25 }
 0x559   : > { %p22_p8 = scmp.ge.s32.totalorder %s25_s29, 4   ;;  %s6505_s25 = smov %s6009_s26 }
 0x55a   : > { %s6506_s26 = smov %s6258_s22  ;;  %s6507_s27 = smov %s6017_s28 }
 0x55b   : > { %s6508_s28 = smov %s6510_s20  ;;  %24 = sbr.rel (!%p22_p8) target bundleno = 11 (0xb), region = 118 }
 0x562   :  { %4573 = vsyncpa [#allocation4], 1 }
 0x563   :  { %4575 = vsyncpa [#allocation4 + $0x1], 1 }
 0x564   :  { %4576 = vsyncpa [#allocation7], 1 }
 0x565   :  { %4577 = vsyncpa [#allocation10], 1 }
 0x566   :  { %4578 = vsyncpa [#allocation5], 1 }
 0x567   :  { %4580 = vsyncpa [#allocation5 + $0x1], 1 }

</bundles_post_ra>
